<compile_context>
chip_gen: v7x
topology: tpu7x:2x2x1
jax: 0.10.0
libtpu: 0.0.40
codegen_flags: <defaults>
</compile_context>

<pallas_src>
import functools
import math

import jax
import jax.numpy as jnp
import numpy as np
from jax.experimental import pallas as pl
from jax.experimental.pallas import tpu as pltpu

ATT_HEAD_NUM = 4


def _round_up(x, m):
    return ((x + m - 1) // m) * m


# --------------------------------------------------------------------------- #
# Shared kernel bodies                                                         #
# --------------------------------------------------------------------------- #
def _source_prep_body(src_ref, wfc_ref, bfc_ref, wk_ref, bk_ref,
                      wv_ref, bv_ref, wo_ref, kT_ref, vwo_ref):
    """s = relu(src @ Wfc^T + bfc); kT = (s @ Wk^T + bk)^T; vwo[h] = v_h @ Wo_h."""
    f32 = jnp.float32
    bf16 = jnp.bfloat16

    src = src_ref[...]                                   # bf16 (cast in the wrapper)
    s = jnp.dot(src, wfc_ref[...], preferred_element_type=f32) + bfc_ref[...]
    s = jnp.maximum(s, 0.0).astype(bf16)                 # relu(trans_fc(source))

    k = jnp.dot(s, wk_ref[...], preferred_element_type=f32) + bk_ref[...]
    kT_ref[...] = k.astype(bf16).T                       # bf16 before transpose (half XLU bytes)

    v = (jnp.dot(s, wv_ref[...], preferred_element_type=f32) + bv_ref[...]).astype(bf16)
    d = wo_ref.shape[0]
    dh = d // ATT_HEAD_NUM
    for h in range(ATT_HEAD_NUM):                        # static head loop
        vwo_ref[h] = jnp.dot(
            v[:, h * dh:(h + 1) * dh], wo_ref[h * dh:(h + 1) * dh, :],
            preferred_element_type=f32).astype(bf16)     # (ns, d), lane-dense


def _collect_body(tgt_ref, adj_ref, kT_ref, vwo_ref, wq_ref, bq_ref, bo_ref,
                  out_ref, acc_ref, *, exp_dtype):
    """Masked multi-head attention over one target-row tile + fused output projection."""
    f32 = jnp.float32
    bf16 = jnp.bfloat16

    tgt = tgt_ref[...]                                   # bf16 (cast in the wrapper)
    # 1/sqrt(dh) attention scale already folded into wq / bq by preprocess_params().
    q = jnp.dot(tgt, wq_ref[...], preferred_element_type=f32) + bq_ref[...]

    adj_mask = adj_ref[...] != 0                         # int8 adjacency -> bool mask
    active = jnp.max(adj_mask.astype(f32), axis=-1, keepdims=True)   # 1.0 / 0.0 per row

    d = q.shape[-1]
    dh = d // ATT_HEAD_NUM
    for h in range(ATT_HEAD_NUM):                        # static head loop
        q_h = q[:, h * dh:(h + 1) * dh].astype(bf16)
        # scores_h = q_h @ k_h^T : kT resident as (d, ns); per-head sublane slice.
        scores = jnp.dot(q_h, kT_ref[h * dh:(h + 1) * dh, :],
                         preferred_element_type=f32)     # (tile_nt, ns) f32
        logits = jnp.where(adj_mask, scores, jnp.float32(-1e30))
        m = jnp.max(logits, axis=-1, keepdims=True)
        # bf16 exp on chips with a bf16 EUP (v6e/v7x); f32 exp on v5e.
        e = jnp.exp((logits - m).astype(exp_dtype))      # masked entries -> exact 0 on active rows
        denom = jnp.sum(e.astype(f32), axis=-1, keepdims=True)       # >= 1 always (no NaN)
        p = (e * pl.reciprocal(denom, approx=True)).astype(bf16)
        # Output projection fused per head: p_h @ (v_h @ Wo_h); accumulate in VMEM scratch.
        pv = jnp.dot(p, vwo_ref[h], preferred_element_type=f32)
        if h == 0:
            acc_ref[...] = pv
        else:
            acc_ref[...] += pv

    # zero-fill rows with no incoming edges (att_res_padded of the reference)
    out_ref[...] = ((acc_ref[...] + bo_ref[...]) * active).astype(out_ref.dtype)


# --------------------------------------------------------------------------- #
# Kernels                                                                      #
# --------------------------------------------------------------------------- #
def _gcn_source_prep_kernel(src_ref, wfc_ref, bfc_ref, wk_ref, bk_ref,
                            wv_ref, bv_ref, wo_ref, kT_ref, vwo_ref):
    _source_prep_body(src_ref, wfc_ref, bfc_ref, wk_ref, bk_ref,
                      wv_ref, bv_ref, wo_ref, kT_ref, vwo_ref)


def _gcn_collect_kernel(tgt_ref, adj_ref, kT_ref, vwo_ref, wq_ref, bq_ref, bo_ref,
                        out_ref, acc_ref, *, exp_dtype):
    _collect_body(tgt_ref, adj_ref, kT_ref, vwo_ref, wq_ref, bq_ref, bo_ref,
                  out_ref, acc_ref, exp_dtype=exp_dtype)


def _gcn_fused_kernel(src_ref, wfc_ref, bfc_ref, wk_ref, bk_ref, wv_ref, bv_ref,
                      wo_ref, wq_ref, bq_ref, bo_ref, tgt_ref, adj_ref,
                      out_ref, kT_sc, vwo_sc, acc_sc, *, exp_dtype):
    # Single-TensorCore path: run the source prep once, keep kT / VWo in VMEM scratch
    # for all subsequent (sequential, "arbitrary") grid steps.
    @pl.when(pl.program_id(0) == 0)
    def _():
        _source_prep_body(src_ref, wfc_ref, bfc_ref, wk_ref, bk_ref,
                          wv_ref, bv_ref, wo_ref, kT_sc, vwo_sc)

    _collect_body(tgt_ref, adj_ref, kT_sc, vwo_sc, wq_ref, bq_ref, bo_ref,
                  out_ref, acc_sc, exp_dtype=exp_dtype)


# --------------------------------------------------------------------------- #
# Wrapper                                                                      #
# --------------------------------------------------------------------------- #
def preprocess_params(params):
    """One-time weight prep (hoist out of the forward path / cache across calls):
    transpose to (in, out), cast to bf16, fold 1/sqrt(dh) into Wq / bq."""
    d = params["wq"].shape[0]
    dh = d // ATT_HEAD_NUM
    scale = 1.0 / math.sqrt(dh)
    bf16 = jnp.bfloat16
    f32 = jnp.float32
    return {
        "wfc": params["wfc"].T.astype(bf16),
        "bfc": params["bfc"].reshape(1, -1).astype(f32),
        "wk": params["wk"].T.astype(bf16),
        "bk": params["bk"].reshape(1, -1).astype(f32),
        "wv": params["wv"].T.astype(bf16),
        "bv": params["bv"].reshape(1, -1).astype(f32),
        "wo": params["wo"].T.astype(bf16),
        "wq": (params["wq"].T * scale).astype(bf16),
        "bq": (params["bq"] * scale).reshape(1, -1).astype(f32),
        "bo": params["bo"].reshape(1, -1).astype(f32),
    }


def _device_kind():
    try:
        return jax.devices()[0].device_kind.lower()
    except Exception:
        return ""


def _vmem_limit_bytes():
    """~75% of physical VMEM: ~96 MiB on v5e/v6e (128 MiB), ~48 MiB on v7x (64 MiB)."""
    try:
        cap = int(pltpu.get_tpu_info().vmem_capacity_bytes)
    except Exception:
        cap = 64 * 1024 * 1024
    return min((cap * 3) // 4, 100 * 1024 * 1024)


def _pick_tile_nt(nt, ns, two_cores):
    cap = 256 if ns <= 2048 else 128          # tighter tile when the resident ns gets large
    if two_cores:
        # ensure the grid has >= 2 steps so both v7x TensorCores get work
        cap = min(cap, max(8, _round_up(pl.cdiv(nt, 2), 8)))
    return min(cap, _round_up(max(nt, 8), 8))


def gcn_collect_forward(target, source, adj, prepped):
    """Pallas implementation of GraphConvolutionCollectLayer.forward for one unit."""
    nt, d = target.shape
    ns = source.shape[0]
    assert d % ATT_HEAD_NUM == 0

    kind = _device_kind()
    is_v5e = ("v5e" in kind) or ("v5 lite" in kind) or ("v5lite" in kind)
    is_v6 = "v6" in kind
    is_v7 = "v7" in kind
    use_bf16_exp = is_v6 or is_v7             # bf16 EUP exists on v6e / v7x (not v5e)
    exp_dtype = jnp.bfloat16 if use_bf16_exp else jnp.float32
    fuse_prep = is_v5e or is_v6               # single TC: fuse prep, skip kT/VWo HBM round trip
    two_cores = is_v7
    adj_bufs = 3 if is_v5e else 2             # extra adj buffer hides v5e's weaker HBM BW

    bf16 = jnp.bfloat16
    f32 = jnp.float32
    vmem_limit = _vmem_limit_bytes()

    target_bf = target.astype(bf16)           # halves the target-tile DMA
    source_bf = source.astype(bf16)
    adj_i8 = (adj != 0).astype(jnp.int8)      # 4x less adj DMA / VMEM than f32

    tile_nt = _pick_tile_nt(nt, ns, two_cores)
    grid = (pl.cdiv(nt, tile_nt),)            # partial trailing block (no host-side row pad)

    def _run(opt_pipeline):
        def const_spec(shape):
            idx = (lambda i: (0, 0)) if len(shape) == 2 else (lambda i: (0, 0, 0))
            if opt_pipeline:
                return pl.BlockSpec(shape, idx, pipeline_mode=pl.Buffered(1))
            return pl.BlockSpec(shape, idx)

        def adj_spec():
            if opt_pipeline and adj_bufs != 2:
                return pl.BlockSpec((tile_nt, ns), lambda i: (i, 0),
                                    pipeline_mode=pl.Buffered(adj_bufs))
            return pl.BlockSpec((tile_nt, ns), lambda i: (i, 0))

        tgt_spec = pl.BlockSpec((tile_nt, d), lambda i: (i, 0))
        out_spec = pl.BlockSpec((tile_nt, d), lambda i: (i, 0))

        if fuse_prep:
            # --- single launch: prep under pl.when + pipelined collect ------- #
            kernel = functools.partial(_gcn_fused_kernel, exp_dtype=exp_dtype)
            return pl.pallas_call(
                kernel,
                out_shape=jax.ShapeDtypeStruct((nt, d), target.dtype),
                grid=grid,
                in_specs=[
                    const_spec((ns, source_bf.shape[1])),     # source (read at step 0 only)
                    const_spec(prepped["wfc"].shape),
                    const_spec(prepped["bfc"].shape),
                    const_spec(prepped["wk"].shape),
                    const_spec(prepped["bk"].shape),
                    const_spec(prepped["wv"].shape),
                    const_spec(prepped["bv"].shape),
                    const_spec(prepped["wo"].shape),
                    const_spec(prepped["wq"].shape),
                    const_spec(prepped["bq"].shape),
                    const_spec(prepped["bo"].shape),
                    tgt_spec,                                  # target rows (pipelined)
                    adj_spec(),                                # adjacency rows (int8, pipelined)
                ],
                out_specs=out_spec,
                scratch_shapes=[
                    pltpu.VMEM((d, ns), bf16),                 # kT (persists across steps)
                    pltpu.VMEM((ATT_HEAD_NUM, ns, d), bf16),   # per-head V @ Wo
                    pltpu.VMEM((tile_nt, d), f32),             # output accumulator
                ],
                compiler_params=pltpu.CompilerParams(
                    dimension_semantics=("arbitrary",),        # scratch must persist across steps
                    vmem_limit_bytes=vmem_limit),
            )(source_bf, prepped["wfc"], prepped["bfc"], prepped["wk"], prepped["bk"],
              prepped["wv"], prepped["bv"], prepped["wo"], prepped["wq"], prepped["bq"],
              prepped["bo"], target_bf, adj_i8)

        # --- v7x / generic path: split prep + "parallel" collect grid -------- #
        vmem_spec = pl.BlockSpec(memory_space=pltpu.MemorySpace.VMEM)
        kT, vwo = pl.pallas_call(
            _gcn_source_prep_kernel,
            out_shape=(jax.ShapeDtypeStruct((d, ns), bf16),
                       jax.ShapeDtypeStruct((ATT_HEAD_NUM, ns, d), bf16)),
            in_specs=[vmem_spec] * 8,
            out_specs=(vmem_spec, vmem_spec),
            compiler_params=pltpu.CompilerParams(vmem_limit_bytes=vmem_limit),
        )(source_bf, prepped["wfc"], prepped["bfc"], prepped["wk"], prepped["bk"],
          prepped["wv"], prepped["bv"], prepped["wo"])

        kernel = functools.partial(_gcn_collect_kernel, exp_dtype=exp_dtype)
        return pl.pallas_call(
            kernel,
            out_shape=jax.ShapeDtypeStruct((nt, d), target.dtype),
            grid=grid,
            in_specs=[
                tgt_spec,                                  # target rows (pipelined)
                adj_spec(),                                # adjacency rows (int8, pipelined)
                const_spec((d, ns)),                       # kT (resident)
                const_spec((ATT_HEAD_NUM, ns, d)),         # V @ Wo (resident)
                const_spec(prepped["wq"].shape),
                const_spec(prepped["bq"].shape),
                const_spec(prepped["bo"].shape),
            ],
            out_specs=out_spec,
            scratch_shapes=[pltpu.VMEM((tile_nt, d), f32)],  # output accumulator
            compiler_params=pltpu.CompilerParams(
                dimension_semantics=("parallel",),
                vmem_limit_bytes=vmem_limit),
        )(target_bf, adj_i8, kT, vwo, prepped["wq"], prepped["bq"], prepped["bo"])

    try:
        out = _run(opt_pipeline=True)
    except Exception:
        # TODO(synk): pipeline_mode=pl.Buffered(n) unsupported on this JAX build;
        # fall back to default double-buffering (correctness identical).
        out = _run(opt_pipeline=False)

    # valid_mp_idx: indices of target rows with >= 1 incoming edge, padded with -1
    # (JAX needs a static size; the torch version returns a variable-length tensor).
    valid_mp_idx = jnp.nonzero(jnp.any(adj_i8 != 0, axis=1), size=nt, fill_value=-1)[0]
    return out, valid_mp_idx


# --------------------------------------------------------------------------- #
# Pure-JAX reference mirroring the PyTorch prepare_message math (f32)          #
# --------------------------------------------------------------------------- #
def reference_forward(target, source, adj, p):
    s = jax.nn.relu(source @ p["wfc"].T + p["bfc"])
    q = target @ p["wq"].T + p["bq"]
    k = s @ p["wk"].T + p["bk"]
    v = s @ p["wv"].T + p["bv"]
    nt, d = q.shape
    ns = k.shape[0]
    dh = d // ATT_HEAD_NUM
    qh = q.reshape(nt, ATT_HEAD_NUM, dh).transpose(1, 0, 2)
    kh = k.reshape(ns, ATT_HEAD_NUM, dh).transpose(1, 0, 2)
    vh = v.reshape(ns, ATT_HEAD_NUM, dh).transpose(1, 0, 2)
    scores = jnp.einsum("hid,hjd->hij", qh, kh) / math.sqrt(dh)
    mask = (adj != 0)[None, :, :]
    logits = jnp.where(mask, scores, -jnp.inf)
    active = (adj != 0).any(axis=1)
    attn = jax.nn.softmax(logits, axis=-1)
    attn = jnp.where(active[None, :, None], attn, 0.0)   # kill NaN rows (no neighbors)
    ctx = jnp.einsum("hij,hjd->hid", attn, vh).transpose(1, 0, 2).reshape(nt, d)
    out = ctx @ p["wo"].T + p["bo"]
    out = out * active[:, None].astype(out.dtype)
    return out


def make_params(key, dim_obj, dim_rel):
    """Deterministic synthetic weights for one collect unit (unit_id=0: REL2SUB)."""
    ks = jax.random.split(key, 10)
    scale = 0.05
    return {
        "wfc": scale * jax.random.normal(ks[0], (dim_obj, dim_rel), jnp.float32),
        "bfc": scale * jax.random.normal(ks[1], (dim_obj,), jnp.float32),
        "wq": scale * jax.random.normal(ks[2], (dim_obj, dim_obj), jnp.float32),
        "bq": scale * jax.random.normal(ks[3], (dim_obj,), jnp.float32),
        "wk": scale * jax.random.normal(ks[4], (dim_obj, dim_obj), jnp.float32),
        "bk": scale * jax.random.normal(ks[5], (dim_obj,), jnp.float32),
        "wv": scale * jax.random.normal(ks[6], (dim_obj, dim_obj), jnp.float32),
        "bv": scale * jax.random.normal(ks[7], (dim_obj,), jnp.float32),
        "wo": scale * jax.random.normal(ks[8], (dim_obj, dim_obj), jnp.float32),
        "bo": scale * jax.random.normal(ks[9], (dim_obj,), jnp.float32),
    }


if __name__ == "__main__":
    key = jax.random.PRNGKey(0)
    k_tgt, k_src, k_adj, k_par = jax.random.split(key, 4)

    n_target, n_source = 16, 16
    dim_obj, dim_rel = 128, 64   # unit_id = 0 (REL2SUB): fc dim_rel->dim_obj, attn embed dim_obj

    target = jax.random.normal(k_tgt, (n_target, dim_obj), jnp.float32)
    source = jax.random.normal(k_src, (n_source, dim_rel), jnp.float32)

    adj = (jax.random.uniform(k_adj, (n_target, n_source)) < 0.3).astype(jnp.float32)
    adj = adj.at[3, :].set(0.0)   # force one inactive target node (zero-padded output row)

    params = make_params(k_par, dim_obj, dim_rel)
    prepped = preprocess_params(params)   # one-time weight prep, reused across forward calls

    collection, valid_mp_idx = gcn_collect_forward(target, source, adj, prepped)
    collection = jax.block_until_ready(collection)
    valid_mp_idx = jax.block_until_ready(valid_mp_idx)

    ref = jax.block_until_ready(reference_forward(target, source, adj, params))
    # bf16 MXU operands / bf16 exp (f32 accumulate) vs an all-f32 reference -> relaxed tolerance.
    np.testing.assert_allclose(np.asarray(collection), np.asarray(ref),
                               rtol=2e-2, atol=2e-2)
    # inactive row must be exactly zero
    assert float(jnp.abs(collection[3]).max()) == 0.0

    print("KERNEL_OK")
</pallas_src>

<mosaic_0001>
module attributes {stable_mosaic.version = 11 : i64} {
  func.func @_gcn_source_prep_kernel(%arg0: memref<16x64xbf16, #tpu.memory_space<vmem>>, %arg1: memref<64x128xbf16, #tpu.memory_space<vmem>>, %arg2: memref<1x128xf32, #tpu.memory_space<vmem>>, %arg3: memref<128x128xbf16, #tpu.memory_space<vmem>>, %arg4: memref<1x128xf32, #tpu.memory_space<vmem>>, %arg5: memref<128x128xbf16, #tpu.memory_space<vmem>>, %arg6: memref<1x128xf32, #tpu.memory_space<vmem>>, %arg7: memref<128x128xbf16, #tpu.memory_space<vmem>>, %arg8: memref<128x16xbf16, #tpu.memory_space<vmem>>, %arg9: memref<4x16x128xbf16, #tpu.memory_space<vmem>>) attributes {dimension_semantics = [], scalar_prefetch = 0 : i64, scratch_operands = 0 : i64, tpu.core_type = #tpu.core_type<tc>} {
    %c0 = arith.constant 0 : index
    %c0_0 = arith.constant 0 : index
    %0 = vector.load %arg0[%c0, %c0_0] : memref<16x64xbf16, #tpu.memory_space<vmem>>, vector<16x64xbf16>
    %c0_1 = arith.constant 0 : index
    %c0_2 = arith.constant 0 : index
    %1 = vector.load %arg1[%c0_1, %c0_2] : memref<64x128xbf16, #tpu.memory_space<vmem>>, vector<64x128xbf16>
    %cst = arith.constant dense<0.000000e+00> : vector<16x128xf32>
    %2 = tpu.matmul %0, %1, %cst {dimension_numbers = #tpu.dot_dimension_numbers<[1], [0], [0], [1], [0, 0, 1, 1], [], []>} : vector<16x64xbf16>, vector<64x128xbf16>, vector<16x128xf32> -> vector<16x128xf32>
    %c0_3 = arith.constant 0 : index
    %c0_4 = arith.constant 0 : index
    %3 = vector.load %arg2[%c0_3, %c0_4] : memref<1x128xf32, #tpu.memory_space<vmem>>, vector<1x128xf32>
    %4 = vector.broadcast %3 : vector<1x128xf32> to vector<16x128xf32>
    %5 = arith.addf %2, %4 : vector<16x128xf32>
    %cst_5 = arith.constant 0.000000e+00 : f32
    %6 = vector.broadcast %cst_5 : f32 to vector<16x128xf32>
    %7 = arith.maximumf %5, %6 : vector<16x128xf32>
    %8 = arith.truncf %7 : vector<16x128xf32> to vector<16x128xbf16>
    %c0_6 = arith.constant 0 : index
    %c0_7 = arith.constant 0 : index
    %9 = vector.load %arg3[%c0_6, %c0_7] : memref<128x128xbf16, #tpu.memory_space<vmem>>, vector<128x128xbf16>
    %cst_8 = arith.constant dense<0.000000e+00> : vector<16x128xf32>
    %10 = tpu.matmul %8, %9, %cst_8 {dimension_numbers = #tpu.dot_dimension_numbers<[1], [0], [0], [1], [0, 0, 1, 1], [], []>} : vector<16x128xbf16>, vector<128x128xbf16>, vector<16x128xf32> -> vector<16x128xf32>
    %c0_9 = arith.constant 0 : index
    %c0_10 = arith.constant 0 : index
    %11 = vector.load %arg4[%c0_9, %c0_10] : memref<1x128xf32, #tpu.memory_space<vmem>>, vector<1x128xf32>
    %12 = vector.broadcast %11 : vector<1x128xf32> to vector<16x128xf32>
    %13 = arith.addf %10, %12 : vector<16x128xf32>
    %14 = arith.truncf %13 : vector<16x128xf32> to vector<16x128xbf16>
    %15 = tpu.transpose %14, [1, 0] : vector<16x128xbf16> -> vector<128x16xbf16>
    %c0_11 = arith.constant 0 : index
    %c0_12 = arith.constant 0 : index
    %16 = vector.load %arg8[%c0_11, %c0_12] : memref<128x16xbf16, #tpu.memory_space<vmem>>, vector<128x16xbf16>
    tpu.vector_store %arg8[%c0_11, %c0_12], %15 {strides = array<i32>} : memref<128x16xbf16, #tpu.memory_space<vmem>>, vector<128x16xbf16>,
    %c0_13 = arith.constant 0 : index
    %c0_14 = arith.constant 0 : index
    %17 = vector.load %arg5[%c0_13, %c0_14] : memref<128x128xbf16, #tpu.memory_space<vmem>>, vector<128x128xbf16>
    %cst_15 = arith.constant dense<0.000000e+00> : vector<16x128xf32>
    %18 = tpu.matmul %8, %17, %cst_15 {dimension_numbers = #tpu.dot_dimension_numbers<[1], [0], [0], [1], [0, 0, 1, 1], [], []>} : vector<16x128xbf16>, vector<128x128xbf16>, vector<16x128xf32> -> vector<16x128xf32>
    %c0_16 = arith.constant 0 : index
    %c0_17 = arith.constant 0 : index
    %19 = vector.load %arg6[%c0_16, %c0_17] : memref<1x128xf32, #tpu.memory_space<vmem>>, vector<1x128xf32>
    %20 = vector.broadcast %19 : vector<1x128xf32> to vector<16x128xf32>
    %21 = arith.addf %18, %20 : vector<16x128xf32>
    %22 = arith.truncf %21 : vector<16x128xf32> to vector<16x128xbf16>
    %23 = vector.extract_strided_slice %22 {offsets = [0, 0], sizes = [16, 32], strides = [1, 1]} : vector<16x128xbf16> to vector<16x32xbf16>
    %c0_18 = arith.constant 0 : index
    %c0_19 = arith.constant 0 : index
    %24 = vector.load %arg7[%c0_18, %c0_19] : memref<128x128xbf16, #tpu.memory_space<vmem>>, vector<32x128xbf16>
    %cst_20 = arith.constant dense<0.000000e+00> : vector<16x128xf32>
    %25 = tpu.matmul %23, %24, %cst_20 {dimension_numbers = #tpu.dot_dimension_numbers<[1], [0], [0], [1], [0, 0, 1, 1], [], []>} : vector<16x32xbf16>, vector<32x128xbf16>, vector<16x128xf32> -> vector<16x128xf32>
    %26 = arith.truncf %25 : vector<16x128xf32> to vector<16x128xbf16>
    %c0_21 = arith.constant 0 : index
    %c0_22 = arith.constant 0 : index
    %c0_23 = arith.constant 0 : index
    %27 = vector.load %arg9[%c0_21, %c0_22, %c0_23] : memref<4x16x128xbf16, #tpu.memory_space<vmem>>, vector<1x16x128xbf16>
    %28 = vector.shape_cast %27 : vector<1x16x128xbf16> to vector<16x128xbf16>
    %29 = vector.shape_cast %26 : vector<16x128xbf16> to vector<1x16x128xbf16>
    tpu.vector_store %arg9[%c0_21, %c0_22, %c0_23], %29 {strides = array<i32>} : memref<4x16x128xbf16, #tpu.memory_space<vmem>>, vector<1x16x128xbf16>,
    %30 = vector.extract_strided_slice %22 {offsets = [0, 32], sizes = [16, 32], strides = [1, 1]} : vector<16x128xbf16> to vector<16x32xbf16>
    %c32 = arith.constant 32 : index
    %c0_24 = arith.constant 0 : index
    %31 = vector.load %arg7[%c32, %c0_24] : memref<128x128xbf16, #tpu.memory_space<vmem>>, vector<32x128xbf16>
    %cst_25 = arith.constant dense<0.000000e+00> : vector<16x128xf32>
    %32 = tpu.matmul %30, %31, %cst_25 {dimension_numbers = #tpu.dot_dimension_numbers<[1], [0], [0], [1], [0, 0, 1, 1], [], []>} : vector<16x32xbf16>, vector<32x128xbf16>, vector<16x128xf32> -> vector<16x128xf32>
    %33 = arith.truncf %32 : vector<16x128xf32> to vector<16x128xbf16>
    %c1 = arith.constant 1 : index
    %c0_26 = arith.constant 0 : index
    %c0_27 = arith.constant 0 : index
    %34 = vector.load %arg9[%c1, %c0_26, %c0_27] : memref<4x16x128xbf16, #tpu.memory_space<vmem>>, vector<1x16x128xbf16>
    %35 = vector.shape_cast %34 : vector<1x16x128xbf16> to vector<16x128xbf16>
    %36 = vector.shape_cast %33 : vector<16x128xbf16> to vector<1x16x128xbf16>
    tpu.vector_store %arg9[%c1, %c0_26, %c0_27], %36 {strides = array<i32>} : memref<4x16x128xbf16, #tpu.memory_space<vmem>>, vector<1x16x128xbf16>,
    %37 = vector.extract_strided_slice %22 {offsets = [0, 64], sizes = [16, 32], strides = [1, 1]} : vector<16x128xbf16> to vector<16x32xbf16>
    %c64 = arith.constant 64 : index
    %c0_28 = arith.constant 0 : index
    %38 = vector.load %arg7[%c64, %c0_28] : memref<128x128xbf16, #tpu.memory_space<vmem>>, vector<32x128xbf16>
    %cst_29 = arith.constant dense<0.000000e+00> : vector<16x128xf32>
    %39 = tpu.matmul %37, %38, %cst_29 {dimension_numbers = #tpu.dot_dimension_numbers<[1], [0], [0], [1], [0, 0, 1, 1], [], []>} : vector<16x32xbf16>, vector<32x128xbf16>, vector<16x128xf32> -> vector<16x128xf32>
    %40 = arith.truncf %39 : vector<16x128xf32> to vector<16x128xbf16>
    %c2 = arith.constant 2 : index
    %c0_30 = arith.constant 0 : index
    %c0_31 = arith.constant 0 : index
    %41 = vector.load %arg9[%c2, %c0_30, %c0_31] : memref<4x16x128xbf16, #tpu.memory_space<vmem>>, vector<1x16x128xbf16>
    %42 = vector.shape_cast %41 : vector<1x16x128xbf16> to vector<16x128xbf16>
    %43 = vector.shape_cast %40 : vector<16x128xbf16> to vector<1x16x128xbf16>
    tpu.vector_store %arg9[%c2, %c0_30, %c0_31], %43 {strides = array<i32>} : memref<4x16x128xbf16, #tpu.memory_space<vmem>>, vector<1x16x128xbf16>,
    %44 = vector.extract_strided_slice %22 {offsets = [0, 96], sizes = [16, 32], strides = [1, 1]} : vector<16x128xbf16> to vector<16x32xbf16>
    %c96 = arith.constant 96 : index
    %c0_32 = arith.constant 0 : index
    %45 = vector.load %arg7[%c96, %c0_32] : memref<128x128xbf16, #tpu.memory_space<vmem>>, vector<32x128xbf16>
    %cst_33 = arith.constant dense<0.000000e+00> : vector<16x128xf32>
    %46 = tpu.matmul %44, %45, %cst_33 {dimension_numbers = #tpu.dot_dimension_numbers<[1], [0], [0], [1], [0, 0, 1, 1], [], []>} : vector<16x32xbf16>, vector<32x128xbf16>, vector<16x128xf32> -> vector<16x128xf32>
    %47 = arith.truncf %46 : vector<16x128xf32> to vector<16x128xbf16>
    %c3 = arith.constant 3 : index
    %c0_34 = arith.constant 0 : index
    %c0_35 = arith.constant 0 : index
    %48 = vector.load %arg9[%c3, %c0_34, %c0_35] : memref<4x16x128xbf16, #tpu.memory_space<vmem>>, vector<1x16x128xbf16>
    %49 = vector.shape_cast %48 : vector<1x16x128xbf16> to vector<16x128xbf16>
    %50 = vector.shape_cast %47 : vector<16x128xbf16> to vector<1x16x128xbf16>
    tpu.vector_store %arg9[%c3, %c0_34, %c0_35], %50 {strides = array<i32>} : memref<4x16x128xbf16, #tpu.memory_space<vmem>>, vector<1x16x128xbf16>,
    return
  }
}

module attributes {stable_mosaic.version = 11 : i64} {
  func.func @_gcn_source_prep_kernel(%arg0: memref<16x64xbf16, #tpu.memory_space<vmem>>, %arg1: memref<64x128xbf16, #tpu.memory_space<vmem>>, %arg2: memref<1x128xf32, #tpu.memory_space<vmem>>, %arg3: memref<128x128xbf16, #tpu.memory_space<vmem>>, %arg4: memref<1x128xf32, #tpu.memory_space<vmem>>, %arg5: memref<128x128xbf16, #tpu.memory_space<vmem>>, %arg6: memref<1x128xf32, #tpu.memory_space<vmem>>, %arg7: memref<128x128xbf16, #tpu.memory_space<vmem>>, %arg8: memref<128x16xbf16, #tpu.memory_space<vmem>>, %arg9: memref<4x16x128xbf16, #tpu.memory_space<vmem>>) attributes {dimension_semantics = [], scalar_prefetch = 0 : i64, scratch_operands = 0 : i64, tpu.core_type = #tpu.core_type<tc>} {
    %c0 = arith.constant 0 : index
    %c0_0 = arith.constant 0 : index
    %0 = vector.load %arg0[%c0, %c0_0] : memref<16x64xbf16, #tpu.memory_space<vmem>>, vector<16x64xbf16>
    %c0_1 = arith.constant 0 : index
    %c0_2 = arith.constant 0 : index
    %1 = vector.load %arg1[%c0_1, %c0_2] : memref<64x128xbf16, #tpu.memory_space<vmem>>, vector<64x128xbf16>
    %cst = arith.constant dense<0.000000e+00> : vector<16x128xf32>
    %2 = tpu.matmul %0, %1, %cst {dimension_numbers = #tpu.dot_dimension_numbers<[1], [0], [0], [1], [0, 0, 1, 1], [], []>} : vector<16x64xbf16>, vector<64x128xbf16>, vector<16x128xf32> -> vector<16x128xf32>
    %c0_3 = arith.constant 0 : index
    %c0_4 = arith.constant 0 : index
    %3 = vector.load %arg2[%c0_3, %c0_4] : memref<1x128xf32, #tpu.memory_space<vmem>>, vector<1x128xf32>
    %4 = vector.broadcast %3 : vector<1x128xf32> to vector<16x128xf32>
    %5 = arith.addf %2, %4 : vector<16x128xf32>
    %cst_5 = arith.constant 0.000000e+00 : f32
    %6 = vector.broadcast %cst_5 : f32 to vector<16x128xf32>
    %7 = arith.maximumf %5, %6 : vector<16x128xf32>
    %8 = arith.truncf %7 : vector<16x128xf32> to vector<16x128xbf16>
    %c0_6 = arith.constant 0 : index
    %c0_7 = arith.constant 0 : index
    %9 = vector.load %arg3[%c0_6, %c0_7] : memref<128x128xbf16, #tpu.memory_space<vmem>>, vector<128x128xbf16>
    %cst_8 = arith.constant dense<0.000000e+00> : vector<16x128xf32>
    %10 = tpu.matmul %8, %9, %cst_8 {dimension_numbers = #tpu.dot_dimension_numbers<[1], [0], [0], [1], [0, 0, 1, 1], [], []>} : vector<16x128xbf16>, vector<128x128xbf16>, vector<16x128xf32> -> vector<16x128xf32>
    %c0_9 = arith.constant 0 : index
    %c0_10 = arith.constant 0 : index
    %11 = vector.load %arg4[%c0_9, %c0_10] : memref<1x128xf32, #tpu.memory_space<vmem>>, vector<1x128xf32>
    %12 = vector.broadcast %11 : vector<1x128xf32> to vector<16x128xf32>
    %13 = arith.addf %10, %12 : vector<16x128xf32>
    %14 = arith.truncf %13 : vector<16x128xf32> to vector<16x128xbf16>
    %15 = tpu.transpose %14, [1, 0] : vector<16x128xbf16> -> vector<128x16xbf16>
    %c0_11 = arith.constant 0 : index
    %c0_12 = arith.constant 0 : index
    %16 = vector.load %arg8[%c0_11, %c0_12] : memref<128x16xbf16, #tpu.memory_space<vmem>>, vector<128x16xbf16>
    tpu.vector_store %arg8[%c0_11, %c0_12], %15 {strides = array<i32>} : memref<128x16xbf16, #tpu.memory_space<vmem>>, vector<128x16xbf16>,
    %c0_13 = arith.constant 0 : index
    %c0_14 = arith.constant 0 : index
    %17 = vector.load %arg5[%c0_13, %c0_14] : memref<128x128xbf16, #tpu.memory_space<vmem>>, vector<128x128xbf16>
    %cst_15 = arith.constant dense<0.000000e+00> : vector<16x128xf32>
    %18 = tpu.matmul %8, %17, %cst_15 {dimension_numbers = #tpu.dot_dimension_numbers<[1], [0], [0], [1], [0, 0, 1, 1], [], []>} : vector<16x128xbf16>, vector<128x128xbf16>, vector<16x128xf32> -> vector<16x128xf32>
    %c0_16 = arith.constant 0 : index
    %c0_17 = arith.constant 0 : index
    %19 = vector.load %arg6[%c0_16, %c0_17] : memref<1x128xf32, #tpu.memory_space<vmem>>, vector<1x128xf32>
    %20 = vector.broadcast %19 : vector<1x128xf32> to vector<16x128xf32>
    %21 = arith.addf %18, %20 : vector<16x128xf32>
    %22 = arith.truncf %21 : vector<16x128xf32> to vector<16x128xbf16>
    %23 = vector.extract_strided_slice %22 {offsets = [0, 0], sizes = [16, 32], strides = [1, 1]} : vector<16x128xbf16> to vector<16x32xbf16>
    %c0_18 = arith.constant 0 : index
    %c0_19 = arith.constant 0 : index
    %24 = vector.load %arg7[%c0_18, %c0_19] : memref<128x128xbf16, #tpu.memory_space<vmem>>, vector<32x128xbf16>
    %cst_20 = arith.constant dense<0.000000e+00> : vector<16x128xf32>
    %25 = tpu.matmul %23, %24, %cst_20 {dimension_numbers = #tpu.dot_dimension_numbers<[1], [0], [0], [1], [0, 0, 1, 1], [], []>} : vector<16x32xbf16>, vector<32x128xbf16>, vector<16x128xf32> -> vector<16x128xf32>
    %26 = arith.truncf %25 : vector<16x128xf32> to vector<16x128xbf16>
    %c0_21 = arith.constant 0 : index
    %c0_22 = arith.constant 0 : index
    %c0_23 = arith.constant 0 : index
    %27 = vector.load %arg9[%c0_21, %c0_22, %c0_23] : memref<4x16x128xbf16, #tpu.memory_space<vmem>>, vector<1x16x128xbf16>
    %28 = vector.shape_cast %27 : vector<1x16x128xbf16> to vector<16x128xbf16>
    %29 = vector.shape_cast %26 : vector<16x128xbf16> to vector<1x16x128xbf16>
    tpu.vector_store %arg9[%c0_21, %c0_22, %c0_23], %29 {strides = array<i32>} : memref<4x16x128xbf16, #tpu.memory_space<vmem>>, vector<1x16x128xbf16>,
    %30 = vector.extract_strided_slice %22 {offsets = [0, 32], sizes = [16, 32], strides = [1, 1]} : vector<16x128xbf16> to vector<16x32xbf16>
    %c32 = arith.constant 32 : index
    %c0_24 = arith.constant 0 : index
    %31 = vector.load %arg7[%c32, %c0_24] : memref<128x128xbf16, #tpu.memory_space<vmem>>, vector<32x128xbf16>
    %cst_25 = arith.constant dense<0.000000e+00> : vector<16x128xf32>
    %32 = tpu.matmul %30, %31, %cst_25 {dimension_numbers = #tpu.dot_dimension_numbers<[1], [0], [0], [1], [0, 0, 1, 1], [], []>} : vector<16x32xbf16>, vector<32x128xbf16>, vector<16x128xf32> -> vector<16x128xf32>
    %33 = arith.truncf %32 : vector<16x128xf32> to vector<16x128xbf16>
    %c1 = arith.constant 1 : index
    %c0_26 = arith.constant 0 : index
    %c0_27 = arith.constant 0 : index
    %34 = vector.load %arg9[%c1, %c0_26, %c0_27] : memref<4x16x128xbf16, #tpu.memory_space<vmem>>, vector<1x16x128xbf16>
    %35 = vector.shape_cast %34 : vector<1x16x128xbf16> to vector<16x128xbf16>
    %36 = vector.shape_cast %33 : vector<16x128xbf16> to vector<1x16x128xbf16>
    tpu.vector_store %arg9[%c1, %c0_26, %c0_27], %36 {strides = array<i32>} : memref<4x16x128xbf16, #tpu.memory_space<vmem>>, vector<1x16x128xbf16>,
    %37 = vector.extract_strided_slice %22 {offsets = [0, 64], sizes = [16, 32], strides = [1, 1]} : vector<16x128xbf16> to vector<16x32xbf16>
    %c64 = arith.constant 64 : index
    %c0_28 = arith.constant 0 : index
    %38 = vector.load %arg7[%c64, %c0_28] : memref<128x128xbf16, #tpu.memory_space<vmem>>, vector<32x128xbf16>
    %cst_29 = arith.constant dense<0.000000e+00> : vector<16x128xf32>
    %39 = tpu.matmul %37, %38, %cst_29 {dimension_numbers = #tpu.dot_dimension_numbers<[1], [0], [0], [1], [0, 0, 1, 1], [], []>} : vector<16x32xbf16>, vector<32x128xbf16>, vector<16x128xf32> -> vector<16x128xf32>
    %40 = arith.truncf %39 : vector<16x128xf32> to vector<16x128xbf16>
    %c2 = arith.constant 2 : index
    %c0_30 = arith.constant 0 : index
    %c0_31 = arith.constant 0 : index
    %41 = vector.load %arg9[%c2, %c0_30, %c0_31] : memref<4x16x128xbf16, #tpu.memory_space<vmem>>, vector<1x16x128xbf16>
    %42 = vector.shape_cast %41 : vector<1x16x128xbf16> to vector<16x128xbf16>
    %43 = vector.shape_cast %40 : vector<16x128xbf16> to vector<1x16x128xbf16>
    tpu.vector_store %arg9[%c2, %c0_30, %c0_31], %43 {strides = array<i32>} : memref<4x16x128xbf16, #tpu.memory_space<vmem>>, vector<1x16x128xbf16>,
    %44 = vector.extract_strided_slice %22 {offsets = [0, 96], sizes = [16, 32], strides = [1, 1]} : vector<16x128xbf16> to vector<16x32xbf16>
    %c96 = arith.constant 96 : index
    %c0_32 = arith.constant 0 : index
    %45 = vector.load %arg7[%c96, %c0_32] : memref<128x128xbf16, #tpu.memory_space<vmem>>, vector<32x128xbf16>
    %cst_33 = arith.constant dense<0.000000e+00> : vector<16x128xf32>
    %46 = tpu.matmul %44, %45, %cst_33 {dimension_numbers = #tpu.dot_dimension_numbers<[1], [0], [0], [1], [0, 0, 1, 1], [], []>} : vector<16x32xbf16>, vector<32x128xbf16>, vector<16x128xf32> -> vector<16x128xf32>
    %47 = arith.truncf %46 : vector<16x128xf32> to vector<16x128xbf16>
    %c3 = arith.constant 3 : index
    %c0_34 = arith.constant 0 : index
    %c0_35 = arith.constant 0 : index
    %48 = vector.load %arg9[%c3, %c0_34, %c0_35] : memref<4x16x128xbf16, #tpu.memory_space<vmem>>, vector<1x16x128xbf16>
    %49 = vector.shape_cast %48 : vector<1x16x128xbf16> to vector<16x128xbf16>
    %50 = vector.shape_cast %47 : vector<16x128xbf16> to vector<1x16x128xbf16>
    tpu.vector_store %arg9[%c3, %c0_34, %c0_35], %50 {strides = array<i32>} : memref<4x16x128xbf16, #tpu.memory_space<vmem>>, vector<1x16x128xbf16>,
    return
  }
}

</mosaic_0001>

<bundles_post_ra>
// kernel: tpu_custom_call.1
= control target key start
LH: loop header
LB: loop body
LE: loop exit
PB: predicated region body
PF: predicated region fallthrough
CT: control target
= control target key end

     0   :  { %15 = vsyncpa [#allocation3], 0  ;;  %s1500_s0 = inlined_call_operand.hbm [shape: bf16[16,64], index: 0, kind: input, shape index: {}]   ;;  %s1501_s1 = inlined_call_operand.hbm [shape: bf16[64,128], index: 1, kind: input, shape index: {}]   ;;  %s1502_s2 = inlined_call_operand.vmem [shape: f32[1,128], index: 2, kind: input, shape index: {}]   ;;  %s1503_s3 = inlined_call_operand.hbm [shape: bf16[128,128], index: 3, kind: input, shape index: {}]   ;;  %s1504_s4 = inlined_call_operand.vmem [shape: f32[1,128], index: 4, kind: input, shape index: {}]   ;;  %s1505_s5 = inlined_call_operand.hbm [shape: bf16[128,128], index: 5, kind: input, shape index: {}]   ;;  %s1506_s6 = inlined_call_operand.vmem [shape: f32[1,128], index: 6, kind: input, shape index: {}]   ;;  %s1507_s7 = inlined_call_operand.hbm [shape: bf16[128,128], index: 7, kind: input, shape index: {}]   ;;  %s1508_s8 = inlined_call_operand.vmem [shape: bf16[128,16], index: 8, kind: output, shape index: {0}]   ;;  %s1509_s9 = inlined_call_operand.hbm [shape: bf16[4,16,128], index: 9, kind: output, shape index: {1}]  }
   0x1   :  { %16 = vsyncpa [#allocation6], 0 }
   0x2   :  { %17 = vsyncpa [#allocation9], 0 }
   0x3   :  { %18 = vsyncpa [#allocation4], 0  ;;  %s1214_s30 = smov [#allocation5]   ;;  %s1215_s11 = smov [#allocation8]  }
   0x4   :  { %s36_s10 = sshll.u32 %s1214_s30, 4  ;;  %s64_s12 = sshll.u32 %s1215_s11, 4  ;;  %s37_s10 = int_to_ptr.vmem [resolvable:$true] %s36_s10  ;;  %s1276_s12 = int_to_ptr.vmem [resolvable:$true] %s64_s12 }
   0x5   :  { %s1074_s15 = scalar_lea.hbm %s1501_s1, 512 }
   0x6   :  { %p1075_p0 = scmp.ne.s32.totalorder %s1501_s1, %s1074_s15  ;;  %p1078_p1 = scmp.lt.u32.totalorder %s1074_s15, %s1501_s1 }
   0x8   :  { %p1080_p2 = pnand %p1078_p1, %p1075_p0 }
   0xa   :  { %1083 = shalt.err (!%p1080_p2)
}
   0xb   :  { %s1084_s20 = scalar_lea.vmem %s37_s10, 512  ;;  %p1089_p4 = scmp.lt.s32.totalorder %s37_s10, %s37_s10 }
   0xc   :  { %p1085_p3 = scmp.ne.s32.totalorder %s37_s10, %s1084_s20  ;;  %p1090_p5 = scmp.lt.s32.totalorder %s1084_s20, %s1084_s20 }
   0xe   :  { %p1091_p6 = por %p1090_p5, %p1089_p4 }
  0x10   :  { %p1092_p7 = pnand %p1091_p6, %p1085_p3 }
  0x12   :  { %1095 = shalt.err (!%p1092_p7)
}
  0x13   :  { %s1216_s21 = smov 64   ;;  %s1217_s22 = smov 4  }
  0x14   :  { %42 = dma.hbm_to_vmem [thread:$0]  %s1501_s1, 512, %s37_s10, [#allocation6], %s1216_s21, %s1216_s21, %s1217_s22  }
  0x15   :  { %s1096_s27 = scalar_lea.hbm %s1505_s5, 1024 }
  0x16   :  { %p1097_p8 = scmp.ne.s32.totalorder %s1505_s5, %s1096_s27  ;;  %p1100_p9 = scmp.lt.u32.totalorder %s1096_s27, %s1505_s5 }
  0x18   :  { %p1102_p10 = pnand %p1100_p9, %p1097_p8 }
  0x1a   :  { %1105 = shalt.err (!%p1102_p10)
}
  0x1b   :  { %s1106_s13 = scalar_lea.vmem %s1276_s12, 1024  ;;  %p1111_p12 = scmp.lt.s32.totalorder %s1276_s12, %s1276_s12 }
  0x1c   :  { %p1107_p11 = scmp.ne.s32.totalorder %s1276_s12, %s1106_s13  ;;  %p1112_p13 = scmp.lt.s32.totalorder %s1106_s13, %s1106_s13 }
  0x1e   :  { %p1113_p0 = por %p1112_p13, %p1111_p12 }
  0x20   :  { %p1114_p1 = pnand %p1113_p0, %p1107_p11 }
  0x22   :  { %1117 = shalt.err (!%p1114_p1)
}
  0x23   :  { %70 = dma.hbm_to_vmem [thread:$0]  %s1505_s5, 1024, %s1276_s12, [#allocation9], %s1216_s21, %s1216_s21, %s1217_s22  }
  0x24   :  { %s1218_s14 = smov [#allocation2]   ;;  %s1219_s16 = smov [#allocation7]  }
  0x25   :  { %s24_s15 = sshll.u32 %s1218_s14, 4  ;;  %s50_s17 = sshll.u32 %s1219_s16, 4  ;;  %s25_s15 = int_to_ptr.vmem [resolvable:$true] %s24_s15  ;;  %s1313_s17 = int_to_ptr.vmem [resolvable:$true] %s50_s17 }
  0x26   :  { %s1118_s20 = scalar_lea.hbm %s1500_s0, 128 }
  0x27   :  { %p1119_p2 = scmp.ne.s32.totalorder %s1500_s0, %s1118_s20  ;;  %p1122_p3 = scmp.lt.u32.totalorder %s1118_s20, %s1500_s0 }
  0x29   :  { %p1124_p4 = pnand %p1122_p3, %p1119_p2 }
  0x2b   :  { %1127 = shalt.err (!%p1124_p4)
}
  0x2c   :  { %s1128_s5 = scalar_lea.vmem %s25_s15, 128  ;;  %p1133_p6 = scmp.lt.s32.totalorder %s25_s15, %s25_s15 }
  0x2d   :  { %p1129_p5 = scmp.ne.s32.totalorder %s25_s15, %s1128_s5  ;;  %p1134_p7 = scmp.lt.s32.totalorder %s1128_s5, %s1128_s5 }
  0x2f   :  { %p1135_p8 = por %p1134_p7, %p1133_p6 }
  0x31   :  { %p1136_p9 = pnand %p1135_p8, %p1129_p5 }
  0x33   :  { %1139 = shalt.err (!%p1136_p9)
}
  0x34   :  { %30 = dma.hbm_to_vmem [thread:$0]  %s1500_s0, 128, %s25_s15, [#allocation3], %s1216_s21, %s1216_s21, %s1217_s22  }
  0x35   :  { %s1140_s30 = scalar_lea.hbm %s1503_s3, 1024 }
  0x36   :  { %p1141_p10 = scmp.ne.s32.totalorder %s1503_s3, %s1140_s30  ;;  %p1144_p11 = scmp.lt.u32.totalorder %s1140_s30, %s1503_s3 }
  0x38   :  { %p1146_p12 = pnand %p1144_p11, %p1141_p10 }
  0x3a   :  { %1149 = shalt.err (!%p1146_p12)
}
  0x3b   :  { %s1150_s14 = scalar_lea.vmem %s1313_s17, 1024  ;;  %p1155_p0 = scmp.lt.s32.totalorder %s1313_s17, %s1313_s17 }
  0x3c   :  { %p1151_p13 = scmp.ne.s32.totalorder %s1313_s17, %s1150_s14  ;;  %p1156_p1 = scmp.lt.s32.totalorder %s1150_s14, %s1150_s14 }
  0x3e   :  { %p1157_p2 = por %p1156_p1, %p1155_p0 }
  0x40   :  { %p1158_p3 = pnand %p1157_p2, %p1151_p13 }
  0x42   :  { %1161 = shalt.err (!%p1158_p3)
}
  0x43   :  { %56 = dma.hbm_to_vmem [thread:$0]  %s1503_s3, 1024, %s1313_s17, [#allocation6], %s1216_s21, %s1216_s21, %s1217_s22  }
  0x44   :  { %s1220_s16 = smov [#allocation10]   ;;  %s1162_s23 = scalar_lea.hbm %s1507_s7, 1024 }
  0x45   :  { %s78_s18 = sshll.u32 %s1220_s16, 4  ;;  %p1163_p4 = scmp.ne.s32.totalorder %s1507_s7, %s1162_s23  ;;  %s79_s18 = int_to_ptr.vmem [resolvable:$true] %s78_s18 }
  0x46   :  { %p1166_p5 = scmp.lt.u32.totalorder %s1162_s23, %s1507_s7 }
  0x48   :  { %p1168_p6 = pnand %p1166_p5, %p1163_p4 }
  0x4a   :  { %1171 = shalt.err (!%p1168_p6)
}
  0x4b   :  { %s1172_s12 = scalar_lea.vmem %s79_s18, 1024  ;;  %p1177_p8 = scmp.lt.s32.totalorder %s79_s18, %s79_s18 }
  0x4c   :  { %p1173_p7 = scmp.ne.s32.totalorder %s79_s18, %s1172_s12  ;;  %p1178_p9 = scmp.lt.s32.totalorder %s1172_s12, %s1172_s12 }
  0x4e   :  { %p1179_p10 = por %p1178_p9, %p1177_p8 }
  0x50   :  { %p1180_p11 = pnand %p1179_p10, %p1173_p7 }
  0x52   :  { %1183 = shalt.err (!%p1180_p11)
}
  0x53   :  { %84 = dma.hbm_to_vmem [thread:$0]  %s1507_s7, 1024, %s79_s18, [#allocation9], %s1216_s21, %s1216_s21, %s1217_s22  }
  0x54   :  { %1206 = dma.done.wait [#allocation3], 128  }
  0x55   :  { %1207 = vsyncadd [#allocation3], 4294967168 }
  0x56   :  { %1208 = dma.done.wait [#allocation6], 1536  }
  0x57   :  { %1209 = vsyncadd [#allocation6], 4294965760 }
  0x58   :  { %1210 = dma.done.wait [#allocation9], 2048  }
  0x59   :  { %1211 = vsyncadd [#allocation9], 4294965248  ;;  %v1221_v0 = vmov 0.0   ;;  %vm1222_vm0 = vmmov 0   ;;  %v1045_v1 = vld [vmem:[#allocation5] sm:$0xff]   ;;  %v1046_v2 = vld [vmem:[#allocation5 + $0x8] sm:$0xff]  }
  0x5a   :  { %948 = vmatprep.subr.bf16.mxu0 %v1221_v0  ;;  %956 = vmatprep.mubr.msk.bf16.mxu0 %vm1222_vm0, %v1221_v0  ;;  %v1050_v3 = vld [vmem:[#allocation7] sm:$0xff]   ;;  %v1047_v4 = vld [vmem:[#allocation5 + $0x10] sm:$0xff]   ;;  %v1052_v5 = vld [vmem:[#allocation7 + $0x8] sm:$0xff]   ;;  %vm147_vm1 = vcmask 523264   ;;  %vm526_vm2 = vcmask 261120   ;;  %s1224_s11 = smov 96  }
  0x5b   :  { %960 = vmatprep.subr.bf16.mxu1 %v1221_v0  ;;  %976 = vmatprep.mubr.msk.bf16.mxu1 %vm1222_vm0, %v1221_v0  ;;  %v1048_v6 = vld [vmem:[#allocation5 + $0x18] sm:$0xff]   ;;  %v1054_v7 = vld [vmem:[#allocation7 + $0x10] sm:$0xff]   ;;  %v1051_v9 = vld [vmem:[#allocation8] sm:$0xff]   ;;  %vm380_vm3 = vcmask 125952   ;;  %s1225_s0 = smov [#allocation11]  }
  0x5c   :  { %949 = vmatpush3.bf16.msra.mxu0 %v1045_v1  ;;  %961 = vmatpush3.bf16.msra.mxu1 %v1050_v3  ;;  %v1049_v8 = vld [vmem:[#allocation2] sm:$0xff]   ;;  %v1053_v11 = vld [vmem:[#allocation8 + $0x8] sm:$0xff]   ;;  %v1058_v12 = vld [vmem:[#allocation7 + $0x20] sm:$0xff]   ;;  %s808_s15 = sshll.u32 %s1225_s0, 4  ;;  %s809_s15 = int_to_ptr.vmem [resolvable:$true] %s808_s15 }
  0x5d   :  { %950 = vmatprep.subr.bf16.mxu0 %v1221_v0  ;;  %962 = vmatprep.subr.bf16.mxu1 %v1221_v0  ;;  %v1056_v10 = vld [vmem:[#allocation7 + $0x18] sm:$0xff]   ;;  %v1055_v13 = vld [vmem:[#allocation8 + $0x10] sm:$0xff]   ;;  %v1060_v14 = vld [vmem:[#allocation7 + $0x28] sm:$0xff]   ;;  %p1189_p13 = scmp.lt.s32.totalorder %s809_s15, %s809_s15 }
  0x5e   :  { %v1057_v15 = vld [vmem:[#allocation8 + $0x18] sm:$0xff]   ;;  %v1059_v16 = vld [vmem:[#allocation8 + $0x20] sm:$0xff]   ;;  %v1061_v17 = vld [vmem:[#allocation8 + $0x28] sm:$0xff]  }
  0x5f   :  { %v1062_v18 = vld [vmem:[#allocation7 + $0x30] sm:$0xff]   ;;  %v1064_v20 = vld [vmem:[#allocation7 + $0x38] sm:$0xff]   ;;  %v1066_v32 = vld [vmem:[#allocation10] sm:$0xff]  }
  0x60   :  { %951 = vmatpush3.bf16.msra.mxu0 %v1046_v2  ;;  %963 = vmatpush3.bf16.msra.mxu1 %v1052_v5  ;;  %v1063_v19 = vld [vmem:[#allocation8 + $0x30] sm:$0xff]   ;;  %v1065_v21 = vld [vmem:[#allocation8 + $0x38] sm:$0xff]   ;;  %v1067_v33 = vld [vmem:[#allocation10 + $0x8] sm:$0xff]  }
  0x61   :  { %952 = vmatprep.subr.bf16.mxu0 %v1221_v0  ;;  %964 = vmatprep.subr.bf16.mxu1 %v1221_v0  ;;  %v824_v22 = vld [vmem:[%s1502_s2] ss:$0 sm:$0xff]  ;;  %v1070_v34 = vld [vmem:[#allocation10 + $0x20] sm:$0xff]   ;;  %v1072_v35 = vld [vmem:[#allocation10 + $0x28] sm:$0xff]  }
  0x62   :  { %v831_v36 = vld [vmem:[%s1504_s4] ss:$0 sm:$0xff]  ;;  %v1068_v52 = vld [vmem:[#allocation10 + $0x10] sm:$0xff]   ;;  %s1223_s4 = smov 32  }
  0x63   :  { %v856_v38 = vld [vmem:[%s1506_s6] ss:$0 sm:$0xff]  ;;  %v1071_v54 = vld [vmem:[#allocation10 + $0x30] sm:$0xff]  }
  0x64   :  { %953 = vmatpush3.bf16.msra.mxu0 %v1047_v4  ;;  %965 = vmatpush3.bf16.msra.mxu1 %v1054_v7  ;;  %v1069_v53 = vld [vmem:[#allocation10 + $0x18] sm:$0xff]  }
  0x65   :  { %954 = vmatprep.subr.bf16.mxu0 %v1221_v0  ;;  %966 = vmatprep.subr.bf16.mxu1 %v1221_v0  ;;  %v1073_v56 = vld [vmem:[#allocation10 + $0x38] sm:$0xff]  }
  0x68   :  { %955 = vmatpush3.bf16.msra.mxu0 %v1048_v6  ;;  %967 = vmatpush3.bf16.msra.mxu1 %v1056_v10 }
  0x69   :  { %980 = vmatprep.subr.bf16.mxu0 %v1221_v0  ;;  %968 = vmatprep.subr.bf16.mxu1 %v1221_v0 }
  0x6b   :  { %957 = vmatmul.mubr.msk.bf16.vlgmr.msra.gmra.mrb[0].mxu0 %vm147_vm1, %v1049_v8 }
  0x6c   :  { %981 = vmatpush3.bf16.msra.mxu0 %v1051_v9  ;;  %996 = vmatprep.mubr.msk.bf16.mxu0 %vm1222_vm0, %v1221_v0 }
  0x6d   :  { %982 = vmatprep.subr.bf16.mxu0 %v1221_v0  ;;  %969 = vmatpush3.bf16.msra.mxu1 %v1058_v12 }
  0x6e   :  { %970 = vmatprep.subr.bf16.mxu1 %v1221_v0 }
  0x70   :  { %983 = vmatpush3.bf16.msra.mxu0 %v1053_v11 }
  0x71   :  { %984 = vmatprep.subr.bf16.mxu0 %v1221_v0  ;;  %971 = vmatpush3.bf16.msra.mxu1 %v1060_v14 }
  0x72   :  { %972 = vmatprep.subr.bf16.mxu1 %v1221_v0 }
  0x74   :  { %985 = vmatpush3.bf16.msra.mxu0 %v1055_v13 }
  0x75   :  { %986 = vmatprep.subr.bf16.mxu0 %v1221_v0  ;;  %973 = vmatpush3.bf16.msra.mxu1 %v1062_v18 }
  0x76   :  { %974 = vmatprep.subr.bf16.mxu1 %v1221_v0 }
  0x78   :  { %987 = vmatpush3.bf16.msra.mxu0 %v1057_v15 }
  0x79   :  { %988 = vmatprep.subr.bf16.mxu0 %v1221_v0  ;;  %975 = vmatpush3.bf16.msra.mxu1 %v1064_v20 }
  0x7a   :  { %1000 = vmatprep.subr.bf16.mxu1 %v1221_v0 }
  0x7c   :  { %989 = vmatpush3.bf16.msra.mxu0 %v1059_v16 }
  0x7d   :  { %990 = vmatprep.subr.bf16.mxu0 %v1221_v0 }
  0x80   :  { %991 = vmatpush3.bf16.msra.mxu0 %v1061_v17 }
  0x81   :  { %992 = vmatprep.subr.bf16.mxu0 %v1221_v0 }
  0x84   :  { %993 = vmatpush3.bf16.msra.mxu0 %v1063_v19 }
  0x85   :  { %994 = vmatprep.subr.bf16.mxu0 %v1221_v0 }
  0x88   :  { %995 = vmatpush3.bf16.msra.mxu0 %v1065_v21 }
  0x89   :  { %1016 = vmatprep.subr.bf16.mxu0 %v1221_v0 }
 0x13e   :  { %v185_v23 = vpop.f32.mrb[0].mxu0 }
 0x13f   :  { %v186_v24 = vadd.f32 %v824_v22, %v185_v23  ;;  %v958_v25 = vpop.f32.mrb[1].mxu0 }
 0x140   :  { %v188_v26 = vpop.f32.mrb[2].mxu0 }
 0x141   :  { %v189_v27 = vadd.f32 %v824_v22, %v188_v26  ;;  %v959_v28 = vpop.f32.mrb[3].mxu0  ;;  %v192_v29 = vmax.f32 %v186_v24, 0.0 }
 0x143   :  { %v193_v30 = vmax.f32 %v189_v27, 0.0 }
 0x145   :  { %v194_v31 = vpack.c.bf16 %v193_v30, %v192_v29 }
 0x147   :  { %977 = vmatmul.mubr.bf16.vlgmr.msra.gmra.mrb[0].mxu1 %v194_v31  ;;  %997 = vmatmul.mubr.bf16.vlgmr.msra.gmra.mrb[4].mxu0 %v194_v31 }
 0x148   :  { %1004 = vmatprep.mubr.msk.bf16.mxu1 %vm1222_vm0, %v1221_v0  ;;  %1020 = vmatprep.mubr.msk.bf16.mxu0 %vm1222_vm0, %v1221_v0 }
 0x149   :  { %1001 = vmatpush3.bf16.msra.mxu1 %v1066_v32  ;;  %1017 = vmatpush3.bf16.msra.mxu0 %v1070_v34 }
 0x14a   :  { %1002 = vmatprep.subr.bf16.mxu1 %v1221_v0  ;;  %1018 = vmatprep.subr.bf16.mxu0 %v1221_v0 }
 0x14d   :  { %1003 = vmatpush3.bf16.msra.mxu1 %v1067_v33  ;;  %1019 = vmatpush3.bf16.msra.mxu0 %v1072_v35 }
 0x14e   :  { %1008 = vmatprep.subr.bf16.mxu1 %v1221_v0 }
 0x21a   :  { %v300_v37 = vpop.f32.mrb[0].mxu1  ;;  %v502_v39 = vpop.f32.mrb[4].mxu0 }
 0x21b   :  { %v978_v40 = vpop.f32.mrb[1].mxu1  ;;  %v998_v41 = vpop.f32.mrb[5].mxu0  ;;  %v301_v44 = vadd.f32 %v831_v36, %v300_v37  ;;  %v503_v45 = vadd.f32 %v856_v38, %v502_v39 }
 0x21c   :  { %v303_v42 = vpop.f32.mrb[2].mxu1  ;;  %v505_v43 = vpop.f32.mrb[6].mxu0 }
 0x21d   :  { %v304_v46 = vadd.f32 %v831_v36, %v303_v42  ;;  %v506_v47 = vadd.f32 %v856_v38, %v505_v43  ;;  %v979_v48 = vpop.f32.mrb[3].mxu1  ;;  %v999_v49 = vpop.f32.mrb[7].mxu0 }
 0x21f   :  { %v509_v50 = vpack.c.bf16 %v506_v47, %v503_v45  ;;  %v307_v51 = vpack.c.bf16 %v304_v46, %v301_v44 }
 0x221   :  { %732 = vrot.lane.b32.xlu1 %v509_v50, %s1223_s4  ;;  %586 = vrot.lane.b32.xlu0 %v509_v50, %s1224_s11 }
 0x222   :  { %1005 = vmatmul.mubr.msk.bf16.vlgmr.msra.gmra.mrb[4].mxu1 %vm526_vm2, %v509_v50 }
 0x223   :  { %1009 = vmatpush3.bf16.msra.mxu1 %v1068_v52  ;;  %1012 = vmatprep.mubr.msk.bf16.mxu1 %vm1222_vm0, %v1221_v0 }
 0x224   :  { %1010 = vmatprep.subr.bf16.mxu1 %v1221_v0 }
 0x225   :  { %659 = vrot.lane.b32.xlu0 %v509_v50, %s1216_s21 }
 0x227   :  { %1011 = vmatpush3.bf16.msra.mxu1 %v1069_v53 }
 0x228   :  { %1024 = vmatprep.subr.bf16.mxu1 %v1221_v0 }
 0x244   :  { %308 = vxpose.xlu1.c.b16.start.end [1/1] (short) %v307_v51, 128 }
 0x293   :  { %v587_v55 = vpop.permute.xlu0 %586  ;;  %v733_v58 = vpop.permute.xlu1 %732 }
 0x294   :  { %1013 = vmatmul.mubr.msk.bf16.vlgmr.msra.gmra.mrb[8].mxu1 %vm526_vm2, %v587_v55 }
 0x295   :  { %1025 = vmatpush3.bf16.msra.mxu1 %v1071_v54  ;;  %1028 = vmatprep.mubr.msk.bf16.mxu1 %vm1222_vm0, %v1221_v0 }
 0x296   :  { %1026 = vmatprep.subr.bf16.mxu1 %v1221_v0 }
 0x297   :  { %v660_v57 = vpop.permute.xlu0 %659 }
 0x298   :  { %1021 = vmatmul.mubr.msk.bf16.vlgmr.msra.gmra.mrb[8].mxu0 %vm526_vm2, %v660_v57 }
 0x299   :  { %1027 = vmatpush3.bf16.msra.mxu1 %v1073_v56 }
 0x29c   :  { %1029 = vmatmul.mubr.msk.bf16.vlgmr.msra.gmra.mrb[12].mxu1 %vm526_vm2, %v733_v58 }
 0x2aa   :  { %v316_v59 = vpop.trf.xlu1 }
 0x2ab   :  { %v840_v60 = vcombine.low %v316_v59, %v316_v59  ;;  %v841_v61 = vcombine.high %v316_v59, %v316_v59 }
 0x2ad   :  { %381 = vst.msk [vmem:[%s1508_s8] sm:$0xf] %vm380_vm3, %v840_v60  ;;  %382 = vst.msk [vmem:[%s1508_s8 + $0x4] sm:$0xf] %vm380_vm3, %v841_v61 }
 0x2ae   :  { %v317_v62 = vpop.trf.xlu1 }
 0x2af   :  { %v842_v63 = vcombine.low %v317_v62, %v317_v62  ;;  %v843_v0 = vcombine.high %v317_v62, %v317_v62 }
 0x2b1   :  { %383 = vst.msk [vmem:[%s1508_s8 + $0x8] sm:$0xf] %vm380_vm3, %v842_v63  ;;  %384 = vst.msk [vmem:[%s1508_s8 + $0xc] sm:$0xf] %vm380_vm3, %v843_v0 }
 0x2b2   :  { %v318_v1 = vpop.trf.xlu1 }
 0x2b3   :  { %v844_v2 = vcombine.low %v318_v1, %v318_v1  ;;  %v845_v3 = vcombine.high %v318_v1, %v318_v1 }
 0x2b5   :  { %385 = vst.msk [vmem:[%s1508_s8 + $0x10] sm:$0xf] %vm380_vm3, %v844_v2  ;;  %386 = vst.msk [vmem:[%s1508_s8 + $0x14] sm:$0xf] %vm380_vm3, %v845_v3 }
 0x2b6   :  { %v319_v4 = vpop.trf.xlu1 }
 0x2b7   :  { %v846_v5 = vcombine.low %v319_v4, %v319_v4  ;;  %v847_v6 = vcombine.high %v319_v4, %v319_v4 }
 0x2b9   :  { %387 = vst.msk [vmem:[%s1508_s8 + $0x18] sm:$0xf] %vm380_vm3, %v846_v5  ;;  %388 = vst.msk [vmem:[%s1508_s8 + $0x1c] sm:$0xf] %vm380_vm3, %v847_v6 }
 0x2ba   :  { %v320_v7 = vpop.trf.xlu1 }
 0x2bb   :  { %v848_v8 = vcombine.low %v320_v7, %v320_v7  ;;  %v849_v9 = vcombine.high %v320_v7, %v320_v7 }
 0x2bd   :  { %389 = vst.msk [vmem:[%s1508_s8 + $0x20] sm:$0xf] %vm380_vm3, %v848_v8  ;;  %390 = vst.msk [vmem:[%s1508_s8 + $0x24] sm:$0xf] %vm380_vm3, %v849_v9 }
 0x2be   :  { %v321_v10 = vpop.trf.xlu1 }
 0x2bf   :  { %v850_v11 = vcombine.low %v321_v10, %v321_v10  ;;  %v851_v12 = vcombine.high %v321_v10, %v321_v10 }
 0x2c1   :  { %391 = vst.msk [vmem:[%s1508_s8 + $0x28] sm:$0xf] %vm380_vm3, %v850_v11  ;;  %392 = vst.msk [vmem:[%s1508_s8 + $0x2c] sm:$0xf] %vm380_vm3, %v851_v12 }
 0x2c2   :  { %v322_v13 = vpop.trf.xlu1 }
 0x2c3   :  { %v852_v14 = vcombine.low %v322_v13, %v322_v13  ;;  %v853_v15 = vcombine.high %v322_v13, %v322_v13 }
 0x2c5   :  { %393 = vst.msk [vmem:[%s1508_s8 + $0x30] sm:$0xf] %vm380_vm3, %v852_v14  ;;  %394 = vst.msk [vmem:[%s1508_s8 + $0x34] sm:$0xf] %vm380_vm3, %v853_v15 }
 0x2c6   :  { %v323_v16 = vpop.trf.xlu1 }
 0x2c7   :  { %v854_v17 = vcombine.low %v323_v16, %v323_v16  ;;  %v855_v18 = vcombine.high %v323_v16, %v323_v16 }
 0x2c9   :  { %395 = vst.msk [vmem:[%s1508_s8 + $0x38] sm:$0xf] %vm380_vm3, %v854_v17  ;;  %396 = vst.msk [vmem:[%s1508_s8 + $0x3c] sm:$0xf] %vm380_vm3, %v855_v18  ;;  %s1184_s8 = scalar_lea.vmem %s809_s15, 512 }
 0x2ca   :  { %p1185_p12 = scmp.ne.s32.totalorder %s809_s15, %s1184_s8  ;;  %p1190_p0 = scmp.lt.s32.totalorder %s1184_s8, %s1184_s8 }
 0x2cc   :  { %p1191_p1 = por %p1190_p0, %p1189_p13 }
 0x2ce   :  { %p1192_p2 = pnand %p1191_p1, %p1185_p12 }
 0x2f5   :  { %v564_v19 = vpop.f32.mrb[4].mxu1 }
 0x2f6   :  { %v1006_v20 = vpop.f32.mrb[5].mxu1 }
 0x2f7   :  { %v567_v21 = vpop.f32.mrb[6].mxu1 }
 0x2f8   :  { %v896_v22 = vpack.c.bf16 %v567_v21, %v564_v19  ;;  %v1007_v23 = vpop.f32.mrb[7].mxu1 }
 0x2fa   :  { %897 = vst [vmem:[#allocation11] sm:$0xff] %v896_v22  }
 0x367   :  { %v637_v24 = vpop.f32.mrb[8].mxu1 }
 0x368   :  { %v1014_v25 = vpop.f32.mrb[9].mxu1 }
 0x369   :  { %v640_v26 = vpop.f32.mrb[10].mxu1 }
 0x36a   :  { %v901_v27 = vpack.c.bf16 %v640_v26, %v637_v24  ;;  %v1015_v28 = vpop.f32.mrb[11].mxu1 }
 0x36b   :  { %v710_v29 = vpop.f32.mrb[8].mxu0 }
 0x36c   :  { %902 = vst [vmem:[#allocation11 + $0x8] sm:$0xff] %v901_v27   ;;  %v1022_v30 = vpop.f32.mrb[9].mxu0 }
 0x36d   :  { %v713_v31 = vpop.f32.mrb[10].mxu0 }
 0x36e   :  { %v906_v32 = vpack.c.bf16 %v713_v31, %v710_v29  ;;  %v1023_v33 = vpop.f32.mrb[11].mxu0 }
 0x36f   :  { %v783_v34 = vpop.f32.mrb[12].mxu1 }
 0x370   :  { %907 = vst [vmem:[#allocation11 + $0x10] sm:$0xff] %v906_v32   ;;  %v1030_v35 = vpop.f32.mrb[13].mxu1 }
 0x371   :  { %v786_v36 = vpop.f32.mrb[14].mxu1 }
 0x372   :  { %v911_v37 = vpack.c.bf16 %v786_v36, %v783_v34  ;;  %v1031_v38 = vpop.f32.mrb[15].mxu1 }
 0x374   :  { %912 = vst [vmem:[#allocation11 + $0x18] sm:$0xff] %v911_v37  }
 0x375   :  { %1195 = shalt.err (!%p1192_p2)
}
 0x376   :  { %s1196_s19 = scalar_lea.hbm %s1509_s9, 512 }
 0x377   :  { %p1197_p3 = scmp.ne.s32.totalorder %s1509_s9, %s1196_s19  ;;  %p1200_p4 = scmp.lt.u32.totalorder %s1196_s19, %s1509_s9 }
 0x379   :  { %p1202_p5 = pnand %p1200_p4, %p1197_p3 }
 0x37b   :  { %1205 = shalt.err (!%p1202_p5)
}
 0x37c   :  { %814 = dma.vmem_to_hbm [thread:$0]  %s809_s15, 512, %s1509_s9, [#allocation4], %s1216_s21, %s1216_s21, %s1217_s22  }
 0x37d   :  { %1212 = dma.done.wait [#allocation4], 512  }
 0x37e   :  { %1213 = vsyncadd [#allocation4], 4294966784 }
 0x37f   :  { %820 = vsyncpa [#allocation3], 1 }
 0x380   :  { %821 = vsyncpa [#allocation6], 1 }
 0x381   :  { %822 = vsyncpa [#allocation9], 1 }
 0x382   :  { %823 = vsyncpa [#allocation4], 1 }

// kernel: tpu_custom_call.1
= control target key start
LH: loop header
LB: loop body
LE: loop exit
PB: predicated region body
PF: predicated region fallthrough
CT: control target
= control target key end

     0   :  { %15 = vsyncpa [#allocation3], 0  ;;  %s1500_s0 = inlined_call_operand.hbm [shape: bf16[16,64], index: 0, kind: input, shape index: {}]   ;;  %s1501_s1 = inlined_call_operand.hbm [shape: bf16[64,128], index: 1, kind: input, shape index: {}]   ;;  %s1502_s2 = inlined_call_operand.vmem [shape: f32[1,128], index: 2, kind: input, shape index: {}]   ;;  %s1503_s3 = inlined_call_operand.hbm [shape: bf16[128,128], index: 3, kind: input, shape index: {}]   ;;  %s1504_s4 = inlined_call_operand.vmem [shape: f32[1,128], index: 4, kind: input, shape index: {}]   ;;  %s1505_s5 = inlined_call_operand.hbm [shape: bf16[128,128], index: 5, kind: input, shape index: {}]   ;;  %s1506_s6 = inlined_call_operand.vmem [shape: f32[1,128], index: 6, kind: input, shape index: {}]   ;;  %s1507_s7 = inlined_call_operand.hbm [shape: bf16[128,128], index: 7, kind: input, shape index: {}]   ;;  %s1508_s8 = inlined_call_operand.vmem [shape: bf16[128,16], index: 8, kind: output, shape index: {0}]   ;;  %s1509_s9 = inlined_call_operand.hbm [shape: bf16[4,16,128], index: 9, kind: output, shape index: {1}]  }
   0x1   :  { %16 = vsyncpa [#allocation6], 0 }
   0x2   :  { %17 = vsyncpa [#allocation9], 0 }
   0x3   :  { %18 = vsyncpa [#allocation4], 0  ;;  %s1214_s30 = smov [#allocation5]   ;;  %s1215_s11 = smov [#allocation8]  }
   0x4   :  { %s36_s10 = sshll.u32 %s1214_s30, 4  ;;  %s64_s12 = sshll.u32 %s1215_s11, 4  ;;  %s37_s10 = int_to_ptr.vmem [resolvable:$true] %s36_s10  ;;  %s1276_s12 = int_to_ptr.vmem [resolvable:$true] %s64_s12 }
   0x5   :  { %s1074_s15 = scalar_lea.hbm %s1501_s1, 512 }
   0x6   :  { %p1075_p0 = scmp.ne.s32.totalorder %s1501_s1, %s1074_s15  ;;  %p1078_p1 = scmp.lt.u32.totalorder %s1074_s15, %s1501_s1 }
   0x8   :  { %p1080_p2 = pnand %p1078_p1, %p1075_p0 }
   0xa   :  { %1083 = shalt.err (!%p1080_p2)
}
   0xb   :  { %s1084_s20 = scalar_lea.vmem %s37_s10, 512  ;;  %p1089_p4 = scmp.lt.s32.totalorder %s37_s10, %s37_s10 }
   0xc   :  { %p1085_p3 = scmp.ne.s32.totalorder %s37_s10, %s1084_s20  ;;  %p1090_p5 = scmp.lt.s32.totalorder %s1084_s20, %s1084_s20 }
   0xe   :  { %p1091_p6 = por %p1090_p5, %p1089_p4 }
  0x10   :  { %p1092_p7 = pnand %p1091_p6, %p1085_p3 }
  0x12   :  { %1095 = shalt.err (!%p1092_p7)
}
  0x13   :  { %s1216_s21 = smov 64   ;;  %s1217_s22 = smov 4  }
  0x14   :  { %42 = dma.hbm_to_vmem [thread:$0]  %s1501_s1, 512, %s37_s10, [#allocation6], %s1216_s21, %s1216_s21, %s1217_s22  }
  0x15   :  { %s1096_s27 = scalar_lea.hbm %s1505_s5, 1024 }
  0x16   :  { %p1097_p8 = scmp.ne.s32.totalorder %s1505_s5, %s1096_s27  ;;  %p1100_p9 = scmp.lt.u32.totalorder %s1096_s27, %s1505_s5 }
  0x18   :  { %p1102_p10 = pnand %p1100_p9, %p1097_p8 }
  0x1a   :  { %1105 = shalt.err (!%p1102_p10)
}
  0x1b   :  { %s1106_s13 = scalar_lea.vmem %s1276_s12, 1024  ;;  %p1111_p12 = scmp.lt.s32.totalorder %s1276_s12, %s1276_s12 }
  0x1c   :  { %p1107_p11 = scmp.ne.s32.totalorder %s1276_s12, %s1106_s13  ;;  %p1112_p13 = scmp.lt.s32.totalorder %s1106_s13, %s1106_s13 }
  0x1e   :  { %p1113_p0 = por %p1112_p13, %p1111_p12 }
  0x20   :  { %p1114_p1 = pnand %p1113_p0, %p1107_p11 }
  0x22   :  { %1117 = shalt.err (!%p1114_p1)
}
  0x23   :  { %70 = dma.hbm_to_vmem [thread:$0]  %s1505_s5, 1024, %s1276_s12, [#allocation9], %s1216_s21, %s1216_s21, %s1217_s22  }
  0x24   :  { %s1218_s14 = smov [#allocation2]   ;;  %s1219_s16 = smov [#allocation7]  }
  0x25   :  { %s24_s15 = sshll.u32 %s1218_s14, 4  ;;  %s50_s17 = sshll.u32 %s1219_s16, 4  ;;  %s25_s15 = int_to_ptr.vmem [resolvable:$true] %s24_s15  ;;  %s1313_s17 = int_to_ptr.vmem [resolvable:$true] %s50_s17 }
  0x26   :  { %s1118_s20 = scalar_lea.hbm %s1500_s0, 128 }
  0x27   :  { %p1119_p2 = scmp.ne.s32.totalorder %s1500_s0, %s1118_s20  ;;  %p1122_p3 = scmp.lt.u32.totalorder %s1118_s20, %s1500_s0 }
  0x29   :  { %p1124_p4 = pnand %p1122_p3, %p1119_p2 }
  0x2b   :  { %1127 = shalt.err (!%p1124_p4)
}
  0x2c   :  { %s1128_s5 = scalar_lea.vmem %s25_s15, 128  ;;  %p1133_p6 = scmp.lt.s32.totalorder %s25_s15, %s25_s15 }
  0x2d   :  { %p1129_p5 = scmp.ne.s32.totalorder %s25_s15, %s1128_s5  ;;  %p1134_p7 = scmp.lt.s32.totalorder %s1128_s5, %s1128_s5 }
  0x2f   :  { %p1135_p8 = por %p1134_p7, %p1133_p6 }
  0x31   :  { %p1136_p9 = pnand %p1135_p8, %p1129_p5 }
  0x33   :  { %1139 = shalt.err (!%p1136_p9)
}
  0x34   :  { %30 = dma.hbm_to_vmem [thread:$0]  %s1500_s0, 128, %s25_s15, [#allocation3], %s1216_s21, %s1216_s21, %s1217_s22  }
  0x35   :  { %s1140_s30 = scalar_lea.hbm %s1503_s3, 1024 }
  0x36   :  { %p1141_p10 = scmp.ne.s32.totalorder %s1503_s3, %s1140_s30  ;;  %p1144_p11 = scmp.lt.u32.totalorder %s1140_s30, %s1503_s3 }
  0x38   :  { %p1146_p12 = pnand %p1144_p11, %p1141_p10 }
  0x3a   :  { %1149 = shalt.err (!%p1146_p12)
}
  0x3b   :  { %s1150_s14 = scalar_lea.vmem %s1313_s17, 1024  ;;  %p1155_p0 = scmp.lt.s32.totalorder %s1313_s17, %s1313_s17 }
  0x3c   :  { %p1151_p13 = scmp.ne.s32.totalorder %s1313_s17, %s1150_s14  ;;  %p1156_p1 = scmp.lt.s32.totalorder %s1150_s14, %s1150_s14 }
  0x3e   :  { %p1157_p2 = por %p1156_p1, %p1155_p0 }
  0x40   :  { %p1158_p3 = pnand %p1157_p2, %p1151_p13 }
  0x42   :  { %1161 = shalt.err (!%p1158_p3)
}
  0x43   :  { %56 = dma.hbm_to_vmem [thread:$0]  %s1503_s3, 1024, %s1313_s17, [#allocation6], %s1216_s21, %s1216_s21, %s1217_s22  }
  0x44   :  { %s1220_s16 = smov [#allocation10]   ;;  %s1162_s23 = scalar_lea.hbm %s1507_s7, 1024 }
  0x45   :  { %s78_s18 = sshll.u32 %s1220_s16, 4  ;;  %p1163_p4 = scmp.ne.s32.totalorder %s1507_s7, %s1162_s23  ;;  %s79_s18 = int_to_ptr.vmem [resolvable:$true] %s78_s18 }
  0x46   :  { %p1166_p5 = scmp.lt.u32.totalorder %s1162_s23, %s1507_s7 }
  0x48   :  { %p1168_p6 = pnand %p1166_p5, %p1163_p4 }
  0x4a   :  { %1171 = shalt.err (!%p1168_p6)
}
  0x4b   :  { %s1172_s12 = scalar_lea.vmem %s79_s18, 1024  ;;  %p1177_p8 = scmp.lt.s32.totalorder %s79_s18, %s79_s18 }
  0x4c   :  { %p1173_p7 = scmp.ne.s32.totalorder %s79_s18, %s1172_s12  ;;  %p1178_p9 = scmp.lt.s32.totalorder %s1172_s12, %s1172_s12 }
  0x4e   :  { %p1179_p10 = por %p1178_p9, %p1177_p8 }
  0x50   :  { %p1180_p11 = pnand %p1179_p10, %p1173_p7 }
  0x52   :  { %1183 = shalt.err (!%p1180_p11)
}
  0x53   :  { %84 = dma.hbm_to_vmem [thread:$0]  %s1507_s7, 1024, %s79_s18, [#allocation9], %s1216_s21, %s1216_s21, %s1217_s22  }
  0x54   :  { %1206 = dma.done.wait [#allocation3], 128  }
  0x55   :  { %1207 = vsyncadd [#allocation3], 4294967168 }
  0x56   :  { %1208 = dma.done.wait [#allocation6], 1536  }
  0x57   :  { %1209 = vsyncadd [#allocation6], 4294965760 }
  0x58   :  { %1210 = dma.done.wait [#allocation9], 2048  }
  0x59   :  { %1211 = vsyncadd [#allocation9], 4294965248  ;;  %v1221_v0 = vmov 0.0   ;;  %vm1222_vm0 = vmmov 0   ;;  %v1045_v1 = vld [vmem:[#allocation5] sm:$0xff]   ;;  %v1046_v2 = vld [vmem:[#allocation5 + $0x8] sm:$0xff]  }
  0x5a   :  { %948 = vmatprep.subr.bf16.mxu0 %v1221_v0  ;;  %956 = vmatprep.mubr.msk.bf16.mxu0 %vm1222_vm0, %v1221_v0  ;;  %v1050_v3 = vld [vmem:[#allocation7] sm:$0xff]   ;;  %v1047_v4 = vld [vmem:[#allocation5 + $0x10] sm:$0xff]   ;;  %v1052_v5 = vld [vmem:[#allocation7 + $0x8] sm:$0xff]   ;;  %vm147_vm1 = vcmask 523264   ;;  %vm526_vm2 = vcmask 261120   ;;  %s1224_s11 = smov 96  }
  0x5b   :  { %960 = vmatprep.subr.bf16.mxu1 %v1221_v0  ;;  %976 = vmatprep.mubr.msk.bf16.mxu1 %vm1222_vm0, %v1221_v0  ;;  %v1048_v6 = vld [vmem:[#allocation5 + $0x18] sm:$0xff]   ;;  %v1054_v7 = vld [vmem:[#allocation7 + $0x10] sm:$0xff]   ;;  %v1051_v9 = vld [vmem:[#allocation8] sm:$0xff]   ;;  %vm380_vm3 = vcmask 125952   ;;  %s1225_s0 = smov [#allocation11]  }
  0x5c   :  { %949 = vmatpush3.bf16.msra.mxu0 %v1045_v1  ;;  %961 = vmatpush3.bf16.msra.mxu1 %v1050_v3  ;;  %v1049_v8 = vld [vmem:[#allocation2] sm:$0xff]   ;;  %v1053_v11 = vld [vmem:[#allocation8 + $0x8] sm:$0xff]   ;;  %v1058_v12 = vld [vmem:[#allocation7 + $0x20] sm:$0xff]   ;;  %s808_s15 = sshll.u32 %s1225_s0, 4  ;;  %s809_s15 = int_to_ptr.vmem [resolvable:$true] %s808_s15 }
  0x5d   :  { %950 = vmatprep.subr.bf16.mxu0 %v1221_v0  ;;  %962 = vmatprep.subr.bf16.mxu1 %v1221_v0  ;;  %v1056_v10 = vld [vmem:[#allocation7 + $0x18] sm:$0xff]   ;;  %v1055_v13 = vld [vmem:[#allocation8 + $0x10] sm:$0xff]   ;;  %v1060_v14 = vld [vmem:[#allocation7 + $0x28] sm:$0xff]   ;;  %p1189_p13 = scmp.lt.s32.totalorder %s809_s15, %s809_s15 }
  0x5e   :  { %v1057_v15 = vld [vmem:[#allocation8 + $0x18] sm:$0xff]   ;;  %v1059_v16 = vld [vmem:[#allocation8 + $0x20] sm:$0xff]   ;;  %v1061_v17 = vld [vmem:[#allocation8 + $0x28] sm:$0xff]  }
  0x5f   :  { %v1062_v18 = vld [vmem:[#allocation7 + $0x30] sm:$0xff]   ;;  %v1064_v20 = vld [vmem:[#allocation7 + $0x38] sm:$0xff]   ;;  %v1066_v32 = vld [vmem:[#allocation10] sm:$0xff]  }
  0x60   :  { %951 = vmatpush3.bf16.msra.mxu0 %v1046_v2  ;;  %963 = vmatpush3.bf16.msra.mxu1 %v1052_v5  ;;  %v1063_v19 = vld [vmem:[#allocation8 + $0x30] sm:$0xff]   ;;  %v1065_v21 = vld [vmem:[#allocation8 + $0x38] sm:$0xff]   ;;  %v1067_v33 = vld [vmem:[#allocation10 + $0x8] sm:$0xff]  }
  0x61   :  { %952 = vmatprep.subr.bf16.mxu0 %v1221_v0  ;;  %964 = vmatprep.subr.bf16.mxu1 %v1221_v0  ;;  %v824_v22 = vld [vmem:[%s1502_s2] ss:$0 sm:$0xff]  ;;  %v1070_v34 = vld [vmem:[#allocation10 + $0x20] sm:$0xff]   ;;  %v1072_v35 = vld [vmem:[#allocation10 + $0x28] sm:$0xff]  }
  0x62   :  { %v831_v36 = vld [vmem:[%s1504_s4] ss:$0 sm:$0xff]  ;;  %v1068_v52 = vld [vmem:[#allocation10 + $0x10] sm:$0xff]   ;;  %s1223_s4 = smov 32  }
  0x63   :  { %v856_v38 = vld [vmem:[%s1506_s6] ss:$0 sm:$0xff]  ;;  %v1071_v54 = vld [vmem:[#allocation10 + $0x30] sm:$0xff]  }
  0x64   :  { %953 = vmatpush3.bf16.msra.mxu0 %v1047_v4  ;;  %965 = vmatpush3.bf16.msra.mxu1 %v1054_v7  ;;  %v1069_v53 = vld [vmem:[#allocation10 + $0x18] sm:$0xff]  }
  0x65   :  { %954 = vmatprep.subr.bf16.mxu0 %v1221_v0  ;;  %966 = vmatprep.subr.bf16.mxu1 %v1221_v0  ;;  %v1073_v56 = vld [vmem:[#allocation10 + $0x38] sm:$0xff]  }
  0x68   :  { %955 = vmatpush3.bf16.msra.mxu0 %v1048_v6  ;;  %967 = vmatpush3.bf16.msra.mxu1 %v1056_v10 }
  0x69   :  { %980 = vmatprep.subr.bf16.mxu0 %v1221_v0  ;;  %968 = vmatprep.subr.bf16.mxu1 %v1221_v0 }
  0x6b   :  { %957 = vmatmul.mubr.msk.bf16.vlgmr.msra.gmra.mrb[0].mxu0 %vm147_vm1, %v1049_v8 }
  0x6c   :  { %981 = vmatpush3.bf16.msra.mxu0 %v1051_v9  ;;  %996 = vmatprep.mubr.msk.bf16.mxu0 %vm1222_vm0, %v1221_v0 }
  0x6d   :  { %982 = vmatprep.subr.bf16.mxu0 %v1221_v0  ;;  %969 = vmatpush3.bf16.msra.mxu1 %v1058_v12 }
  0x6e   :  { %970 = vmatprep.subr.bf16.mxu1 %v1221_v0 }
  0x70   :  { %983 = vmatpush3.bf16.msra.mxu0 %v1053_v11 }
  0x71   :  { %984 = vmatprep.subr.bf16.mxu0 %v1221_v0  ;;  %971 = vmatpush3.bf16.msra.mxu1 %v1060_v14 }
  0x72   :  { %972 = vmatprep.subr.bf16.mxu1 %v1221_v0 }
  0x74   :  { %985 = vmatpush3.bf16.msra.mxu0 %v1055_v13 }
  0x75   :  { %986 = vmatprep.subr.bf16.mxu0 %v1221_v0  ;;  %973 = vmatpush3.bf16.msra.mxu1 %v1062_v18 }
  0x76   :  { %974 = vmatprep.subr.bf16.mxu1 %v1221_v0 }
  0x78   :  { %987 = vmatpush3.bf16.msra.mxu0 %v1057_v15 }
  0x79   :  { %988 = vmatprep.subr.bf16.mxu0 %v1221_v0  ;;  %975 = vmatpush3.bf16.msra.mxu1 %v1064_v20 }
  0x7a   :  { %1000 = vmatprep.subr.bf16.mxu1 %v1221_v0 }
  0x7c   :  { %989 = vmatpush3.bf16.msra.mxu0 %v1059_v16 }
  0x7d   :  { %990 = vmatprep.subr.bf16.mxu0 %v1221_v0 }
  0x80   :  { %991 = vmatpush3.bf16.msra.mxu0 %v1061_v17 }
  0x81   :  { %992 = vmatprep.subr.bf16.mxu0 %v1221_v0 }
  0x84   :  { %993 = vmatpush3.bf16.msra.mxu0 %v1063_v19 }
  0x85   :  { %994 = vmatprep.subr.bf16.mxu0 %v1221_v0 }
  0x88   :  { %995 = vmatpush3.bf16.msra.mxu0 %v1065_v21 }
  0x89   :  { %1016 = vmatprep.subr.bf16.mxu0 %v1221_v0 }
 0x13e   :  { %v185_v23 = vpop.f32.mrb[0].mxu0 }
 0x13f   :  { %v186_v24 = vadd.f32 %v824_v22, %v185_v23  ;;  %v958_v25 = vpop.f32.mrb[1].mxu0 }
 0x140   :  { %v188_v26 = vpop.f32.mrb[2].mxu0 }
 0x141   :  { %v189_v27 = vadd.f32 %v824_v22, %v188_v26  ;;  %v959_v28 = vpop.f32.mrb[3].mxu0  ;;  %v192_v29 = vmax.f32 %v186_v24, 0.0 }
 0x143   :  { %v193_v30 = vmax.f32 %v189_v27, 0.0 }
 0x145   :  { %v194_v31 = vpack.c.bf16 %v193_v30, %v192_v29 }
 0x147   :  { %977 = vmatmul.mubr.bf16.vlgmr.msra.gmra.mrb[0].mxu1 %v194_v31  ;;  %997 = vmatmul.mubr.bf16.vlgmr.msra.gmra.mrb[4].mxu0 %v194_v31 }
 0x148   :  { %1004 = vmatprep.mubr.msk.bf16.mxu1 %vm1222_vm0, %v1221_v0  ;;  %1020 = vmatprep.mubr.msk.bf16.mxu0 %vm1222_vm0, %v1221_v0 }
 0x149   :  { %1001 = vmatpush3.bf16.msra.mxu1 %v1066_v32  ;;  %1017 = vmatpush3.bf16.msra.mxu0 %v1070_v34 }
 0x14a   :  { %1002 = vmatprep.subr.bf16.mxu1 %v1221_v0  ;;  %1018 = vmatprep.subr.bf16.mxu0 %v1221_v0 }
 0x14d   :  { %1003 = vmatpush3.bf16.msra.mxu1 %v1067_v33  ;;  %1019 = vmatpush3.bf16.msra.mxu0 %v1072_v35 }
 0x14e   :  { %1008 = vmatprep.subr.bf16.mxu1 %v1221_v0 }
 0x21a   :  { %v300_v37 = vpop.f32.mrb[0].mxu1  ;;  %v502_v39 = vpop.f32.mrb[4].mxu0 }
 0x21b   :  { %v978_v40 = vpop.f32.mrb[1].mxu1  ;;  %v998_v41 = vpop.f32.mrb[5].mxu0  ;;  %v301_v44 = vadd.f32 %v831_v36, %v300_v37  ;;  %v503_v45 = vadd.f32 %v856_v38, %v502_v39 }
 0x21c   :  { %v303_v42 = vpop.f32.mrb[2].mxu1  ;;  %v505_v43 = vpop.f32.mrb[6].mxu0 }
 0x21d   :  { %v304_v46 = vadd.f32 %v831_v36, %v303_v42  ;;  %v506_v47 = vadd.f32 %v856_v38, %v505_v43  ;;  %v979_v48 = vpop.f32.mrb[3].mxu1  ;;  %v999_v49 = vpop.f32.mrb[7].mxu0 }
 0x21f   :  { %v509_v50 = vpack.c.bf16 %v506_v47, %v503_v45  ;;  %v307_v51 = vpack.c.bf16 %v304_v46, %v301_v44 }
 0x221   :  { %732 = vrot.lane.b32.xlu1 %v509_v50, %s1223_s4  ;;  %586 = vrot.lane.b32.xlu0 %v509_v50, %s1224_s11 }
 0x222   :  { %1005 = vmatmul.mubr.msk.bf16.vlgmr.msra.gmra.mrb[4].mxu1 %vm526_vm2, %v509_v50 }
 0x223   :  { %1009 = vmatpush3.bf16.msra.mxu1 %v1068_v52  ;;  %1012 = vmatprep.mubr.msk.bf16.mxu1 %vm1222_vm0, %v1221_v0 }
 0x224   :  { %1010 = vmatprep.subr.bf16.mxu1 %v1221_v0 }
 0x225   :  { %659 = vrot.lane.b32.xlu0 %v509_v50, %s1216_s21 }
 0x227   :  { %1011 = vmatpush3.bf16.msra.mxu1 %v1069_v53 }
 0x228   :  { %1024 = vmatprep.subr.bf16.mxu1 %v1221_v0 }
 0x244   :  { %308 = vxpose.xlu1.c.b16.start.end [1/1] (short) %v307_v51, 128 }
 0x293   :  { %v587_v55 = vpop.permute.xlu0 %586  ;;  %v733_v58 = vpop.permute.xlu1 %732 }
 0x294   :  { %1013 = vmatmul.mubr.msk.bf16.vlgmr.msra.gmra.mrb[8].mxu1 %vm526_vm2, %v587_v55 }
 0x295   :  { %1025 = vmatpush3.bf16.msra.mxu1 %v1071_v54  ;;  %1028 = vmatprep.mubr.msk.bf16.mxu1 %vm1222_vm0, %v1221_v0 }
 0x296   :  { %1026 = vmatprep.subr.bf16.mxu1 %v1221_v0 }
 0x297   :  { %v660_v57 = vpop.permute.xlu0 %659 }
 0x298   :  { %1021 = vmatmul.mubr.msk.bf16.vlgmr.msra.gmra.mrb[8].mxu0 %vm526_vm2, %v660_v57 }
 0x299   :  { %1027 = vmatpush3.bf16.msra.mxu1 %v1073_v56 }
 0x29c   :  { %1029 = vmatmul.mubr.msk.bf16.vlgmr.msra.gmra.mrb[12].mxu1 %vm526_vm2, %v733_v58 }
 0x2aa   :  { %v316_v59 = vpop.trf.xlu1 }
 0x2ab   :  { %v840_v60 = vcombine.low %v316_v59, %v316_v59  ;;  %v841_v61 = vcombine.high %v316_v59, %v316_v59 }
 0x2ad   :  { %381 = vst.msk [vmem:[%s1508_s8] sm:$0xf] %vm380_vm3, %v840_v60  ;;  %382 = vst.msk [vmem:[%s1508_s8 + $0x4] sm:$0xf] %vm380_vm3, %v841_v61 }
 0x2ae   :  { %v317_v62 = vpop.trf.xlu1 }
 0x2af   :  { %v842_v63 = vcombine.low %v317_v62, %v317_v62  ;;  %v843_v0 = vcombine.high %v317_v62, %v317_v62 }
 0x2b1   :  { %383 = vst.msk [vmem:[%s1508_s8 + $0x8] sm:$0xf] %vm380_vm3, %v842_v63  ;;  %384 = vst.msk [vmem:[%s1508_s8 + $0xc] sm:$0xf] %vm380_vm3, %v843_v0 }
 0x2b2   :  { %v318_v1 = vpop.trf.xlu1 }
 0x2b3   :  { %v844_v2 = vcombine.low %v318_v1, %v318_v1  ;;  %v845_v3 = vcombine.high %v318_v1, %v318_v1 }
 0x2b5   :  { %385 = vst.msk [vmem:[%s1508_s8 + $0x10] sm:$0xf] %vm380_vm3, %v844_v2  ;;  %386 = vst.msk [vmem:[%s1508_s8 + $0x14] sm:$0xf] %vm380_vm3, %v845_v3 }
 0x2b6   :  { %v319_v4 = vpop.trf.xlu1 }
 0x2b7   :  { %v846_v5 = vcombine.low %v319_v4, %v319_v4  ;;  %v847_v6 = vcombine.high %v319_v4, %v319_v4 }
 0x2b9   :  { %387 = vst.msk [vmem:[%s1508_s8 + $0x18] sm:$0xf] %vm380_vm3, %v846_v5  ;;  %388 = vst.msk [vmem:[%s1508_s8 + $0x1c] sm:$0xf] %vm380_vm3, %v847_v6 }
 0x2ba   :  { %v320_v7 = vpop.trf.xlu1 }
 0x2bb   :  { %v848_v8 = vcombine.low %v320_v7, %v320_v7  ;;  %v849_v9 = vcombine.high %v320_v7, %v320_v7 }
 0x2bd   :  { %389 = vst.msk [vmem:[%s1508_s8 + $0x20] sm:$0xf] %vm380_vm3, %v848_v8  ;;  %390 = vst.msk [vmem:[%s1508_s8 + $0x24] sm:$0xf] %vm380_vm3, %v849_v9 }
 0x2be   :  { %v321_v10 = vpop.trf.xlu1 }
 0x2bf   :  { %v850_v11 = vcombine.low %v321_v10, %v321_v10  ;;  %v851_v12 = vcombine.high %v321_v10, %v321_v10 }
 0x2c1   :  { %391 = vst.msk [vmem:[%s1508_s8 + $0x28] sm:$0xf] %vm380_vm3, %v850_v11  ;;  %392 = vst.msk [vmem:[%s1508_s8 + $0x2c] sm:$0xf] %vm380_vm3, %v851_v12 }
 0x2c2   :  { %v322_v13 = vpop.trf.xlu1 }
 0x2c3   :  { %v852_v14 = vcombine.low %v322_v13, %v322_v13  ;;  %v853_v15 = vcombine.high %v322_v13, %v322_v13 }
 0x2c5   :  { %393 = vst.msk [vmem:[%s1508_s8 + $0x30] sm:$0xf] %vm380_vm3, %v852_v14  ;;  %394 = vst.msk [vmem:[%s1508_s8 + $0x34] sm:$0xf] %vm380_vm3, %v853_v15 }
 0x2c6   :  { %v323_v16 = vpop.trf.xlu1 }
 0x2c7   :  { %v854_v17 = vcombine.low %v323_v16, %v323_v16  ;;  %v855_v18 = vcombine.high %v323_v16, %v323_v16 }
 0x2c9   :  { %395 = vst.msk [vmem:[%s1508_s8 + $0x38] sm:$0xf] %vm380_vm3, %v854_v17  ;;  %396 = vst.msk [vmem:[%s1508_s8 + $0x3c] sm:$0xf] %vm380_vm3, %v855_v18  ;;  %s1184_s8 = scalar_lea.vmem %s809_s15, 512 }
 0x2ca   :  { %p1185_p12 = scmp.ne.s32.totalorder %s809_s15, %s1184_s8  ;;  %p1190_p0 = scmp.lt.s32.totalorder %s1184_s8, %s1184_s8 }
 0x2cc   :  { %p1191_p1 = por %p1190_p0, %p1189_p13 }
 0x2ce   :  { %p1192_p2 = pnand %p1191_p1, %p1185_p12 }
 0x2f5   :  { %v564_v19 = vpop.f32.mrb[4].mxu1 }
 0x2f6   :  { %v1006_v20 = vpop.f32.mrb[5].mxu1 }
 0x2f7   :  { %v567_v21 = vpop.f32.mrb[6].mxu1 }
 0x2f8   :  { %v896_v22 = vpack.c.bf16 %v567_v21, %v564_v19  ;;  %v1007_v23 = vpop.f32.mrb[7].mxu1 }
 0x2fa   :  { %897 = vst [vmem:[#allocation11] sm:$0xff] %v896_v22  }
 0x367   :  { %v637_v24 = vpop.f32.mrb[8].mxu1 }
 0x368   :  { %v1014_v25 = vpop.f32.mrb[9].mxu1 }
 0x369   :  { %v640_v26 = vpop.f32.mrb[10].mxu1 }
 0x36a   :  { %v901_v27 = vpack.c.bf16 %v640_v26, %v637_v24  ;;  %v1015_v28 = vpop.f32.mrb[11].mxu1 }
 0x36b   :  { %v710_v29 = vpop.f32.mrb[8].mxu0 }
 0x36c   :  { %902 = vst [vmem:[#allocation11 + $0x8] sm:$0xff] %v901_v27   ;;  %v1022_v30 = vpop.f32.mrb[9].mxu0 }
 0x36d   :  { %v713_v31 = vpop.f32.mrb[10].mxu0 }
 0x36e   :  { %v906_v32 = vpack.c.bf16 %v713_v31, %v710_v29  ;;  %v1023_v33 = vpop.f32.mrb[11].mxu0 }
 0x36f   :  { %v783_v34 = vpop.f32.mrb[12].mxu1 }
 0x370   :  { %907 = vst [vmem:[#allocation11 + $0x10] sm:$0xff] %v906_v32   ;;  %v1030_v35 = vpop.f32.mrb[13].mxu1 }
 0x371   :  { %v786_v36 = vpop.f32.mrb[14].mxu1 }
 0x372   :  { %v911_v37 = vpack.c.bf16 %v786_v36, %v783_v34  ;;  %v1031_v38 = vpop.f32.mrb[15].mxu1 }
 0x374   :  { %912 = vst [vmem:[#allocation11 + $0x18] sm:$0xff] %v911_v37  }
 0x375   :  { %1195 = shalt.err (!%p1192_p2)
}
 0x376   :  { %s1196_s19 = scalar_lea.hbm %s1509_s9, 512 }
 0x377   :  { %p1197_p3 = scmp.ne.s32.totalorder %s1509_s9, %s1196_s19  ;;  %p1200_p4 = scmp.lt.u32.totalorder %s1196_s19, %s1509_s9 }
 0x379   :  { %p1202_p5 = pnand %p1200_p4, %p1197_p3 }
 0x37b   :  { %1205 = shalt.err (!%p1202_p5)
}
 0x37c   :  { %814 = dma.vmem_to_hbm [thread:$0]  %s809_s15, 512, %s1509_s9, [#allocation4], %s1216_s21, %s1216_s21, %s1217_s22  }
 0x37d   :  { %1212 = dma.done.wait [#allocation4], 512  }
 0x37e   :  { %1213 = vsyncadd [#allocation4], 4294966784 }
 0x37f   :  { %820 = vsyncpa [#allocation3], 1 }
 0x380   :  { %821 = vsyncpa [#allocation6], 1 }
 0x381   :  { %822 = vsyncpa [#allocation9], 1 }
 0x382   :  { %823 = vsyncpa [#allocation4], 1 }

</bundles_post_ra>
